<compile_context>
chip_gen: v7x
topology: tpu7x:2x2x1
jax: 0.10.0
libtpu: 0.0.40
codegen_flags: <defaults>
</compile_context>

<pallas_src>
import functools

import jax
import jax.numpy as jnp
from jax.experimental import pallas as pl
from jax.experimental.pallas import tpu as pltpu

MIA_GELU_MAGIC_FACTOR = 0.5
MIA_GELU_MAGIC_SUMMAND = 0.044715
MIA_EPSILON = 1e-5
_SQRT_2_OVER_PI = 0.7978845608028654
_NEG_BIG = -1e30                      # finite "-inf" for causal masking


def _layernorm(x, scale, shift):
    mean = jnp.mean(x, axis=-1, keepdims=True)
    var = jnp.mean((x - mean) ** 2, axis=-1, keepdims=True)   # unbiased=False
    return scale * ((x - mean) / jnp.sqrt(var + MIA_EPSILON)) + shift


def _mia_gelu(x):
    return (MIA_GELU_MAGIC_FACTOR * x *
            (1.0 + jnp.tanh(_SQRT_2_OVER_PI *
                            (x + MIA_GELU_MAGIC_SUMMAND * x ** 3))))


def decoder_block_kernel(x_ref,
                         ln1s_ref, ln1b_ref,
                         wqkv_ref, bqkv_ref,
                         wo_ref, bo_ref,
                         ln2s_ref, ln2b_ref,
                         w1_ref, b1_ref, w2_ref, b2_ref,
                         o_ref, *, num_heads, matmul_dtype):
    bb, T, D = x_ref.shape
    hd = D // num_heads

    def mm(a, w_ref, b_ref):
        """a @ W + b with bf16 (or f32) MXU inputs and f32 accumulation."""
        out = jnp.dot(a.astype(matmul_dtype),
                      w_ref[...].astype(matmul_dtype),
                      preferred_element_type=jnp.float32)
        return out + b_ref[...]

    # rows of the 2-D view are ordered (batch, time)
    x = x_ref[...].astype(jnp.float32).reshape(bb * T, D)

    # ----------------- sub-layer 1: LN1 -> causal MHA -> residual ----------
    h = _layernorm(x, ln1s_ref[...], ln1b_ref[...])

    # fused QKV projection; 1/sqrt(hd) already folded into the Q columns.
    qkv = mm(h, wqkv_ref, bqkv_ref)                           # (bb*T, 3D)
    q, k, v = qkv[:, :D], qkv[:, D:2 * D], qkv[:, 2 * D:]

    def split_heads(z):                                       # -> (bb*H, T, hd)
        return jnp.stack(
            [z[b * T:(b + 1) * T, hh * hd:(hh + 1) * hd]
             for b in range(bb) for hh in range(num_heads)], axis=0)

    qh = split_heads(q).astype(matmul_dtype)
    kh = split_heads(k).astype(matmul_dtype)
    vh = split_heads(v).astype(matmul_dtype)

    # one batched MXU op over all (batch, head) groups
    scores = jnp.einsum("gqd,gkd->gqk", qh, kh,
                        preferred_element_type=jnp.float32)   # (G, T, T)

    row = jax.lax.broadcasted_iota(jnp.int32, (T, T), 0)      # query index
    col = jax.lax.broadcasted_iota(jnp.int32, (T, T), 1)      # key index
    causal = (col <= row)[None, :, :]
    scores = jnp.where(causal, scores, _NEG_BIG)

    scores = scores - jnp.max(scores, axis=-1, keepdims=True)
    p = jnp.exp(scores)                                       # f32 on EUP/VPU
    denom = jnp.sum(p, axis=-1, keepdims=True)
    p = p * pl.reciprocal(denom, approx=True)                 # EUP, ~free

    ctx = jnp.einsum("gqk,gkd->gqd", p.astype(matmul_dtype), vh,
                     preferred_element_type=jnp.float32)      # (G, T, hd)

    # merge heads back to (bb*T, D): lane concat per batch, sublane concat over batch
    ctx2 = jnp.concatenate(
        [jnp.concatenate([ctx[b * num_heads + hh] for hh in range(num_heads)],
                         axis=-1)
         for b in range(bb)], axis=0)

    attn_out = mm(ctx2, wo_ref, bo_ref)
    # TODO(synk): dropout (shortcut_layer / attention dropout) is identity in eval mode.
    x = x + attn_out

    # ----------------- sub-layer 2: LN2 -> FFN -> residual -----------------
    h = _layernorm(x, ln2s_ref[...], ln2b_ref[...])
    h = mm(h, w1_ref, b1_ref)
    h = _mia_gelu(h)
    h = mm(h, w2_ref, b2_ref)

    o_ref[...] = (x + h).reshape(bb, T, D).astype(o_ref.dtype)


def mia_decoder_block(x, params, num_heads, *,
                      batch_block=None, matmul_dtype=jnp.bfloat16):
    B, T, D = x.shape
    (ln1s, ln1b, wq, bq, wk, bk, wv, bv, wo, bo,
     ln2s, ln2b, w1, b1, w2, b2) = params
    hd = D // num_heads

    # Host-side: fold the attention scale into the Q projection and fuse QKV.
    inv_scale = jnp.float32(1.0 / (hd ** 0.5))
    wqkv = jnp.concatenate([wq * inv_scale, wk, wv], axis=1)  # (D, 3D)
    bqkv = jnp.concatenate([bq * inv_scale, bk, bv], axis=1)  # (1, 3D)

    if batch_block is None:
        # Tiny shapes: fold the whole batch into one grid step (no per-step
        # pipeline overhead).  For larger B / v7x pick batch_block = B // (2k)
        # so the parallel grid has an even number of steps for both TCs.
        batch_block = B
    assert B % batch_block == 0

    full = lambda shape: pl.BlockSpec(shape, lambda b: tuple(0 for _ in shape))
    in_specs = [
        pl.BlockSpec((batch_block, T, D), lambda b: (b, 0, 0)),   # x
        full((1, D)), full((1, D)),                               # ln1 scale/shift
        full((D, 3 * D)), full((1, 3 * D)),                       # fused wqkv, bqkv
        full((D, D)), full((1, D)),                               # wo, bo
        full((1, D)), full((1, D)),                               # ln2 scale/shift
        full((D, 4 * D)), full((1, 4 * D)),                       # ffn w1, b1
        full((4 * D, D)), full((1, D)),                           # ffn w2, b2
    ]

    kernel = functools.partial(decoder_block_kernel,
                               num_heads=num_heads, matmul_dtype=matmul_dtype)

    return pl.pallas_call(
        kernel,
        out_shape=jax.ShapeDtypeStruct((B, T, D), x.dtype),
        grid_spec=pltpu.PrefetchScalarGridSpec(
            num_scalar_prefetch=0,
            grid=(B // batch_block,),
            in_specs=in_specs,
            out_specs=pl.BlockSpec((batch_block, T, D), lambda b: (b, 0, 0)),
        ),
        compiler_params=pltpu.CompilerParams(
            dimension_semantics=("parallel",),
            vmem_limit_bytes=64 * 1024 * 1024),
    )(x, ln1s, ln1b, wqkv, bqkv, wo, bo, ln2s, ln2b, w1, b1, w2, b2)


# ----------------------------- pure-JAX reference ---------------------------
def reference_block(x, params, num_heads):
    (ln1s, ln1b, wq, bq, wk, bk, wv, bv, wo, bo,
     ln2s, ln2b, w1, b1, w2, b2) = params
    B, T, D = x.shape
    hd = D // num_heads

    def ln(z, s, sh):
        m = z.mean(-1, keepdims=True)
        v = ((z - m) ** 2).mean(-1, keepdims=True)
        return s * ((z - m) / jnp.sqrt(v + MIA_EPSILON)) + sh

    h = ln(x, ln1s, ln1b)
    q = h @ wq + bq
    k = h @ wk + bk
    v = h @ wv + bv
    q = q.reshape(B, T, num_heads, hd).transpose(0, 2, 1, 3)
    k = k.reshape(B, T, num_heads, hd).transpose(0, 2, 1, 3)
    v = v.reshape(B, T, num_heads, hd).transpose(0, 2, 1, 3)
    scores = jnp.einsum("bhqd,bhkd->bhqk", q, k) / jnp.sqrt(jnp.float32(hd))
    mask = jnp.tril(jnp.ones((T, T), bool))
    scores = jnp.where(mask, scores, -jnp.inf)
    p = jax.nn.softmax(scores, axis=-1)
    ctx = jnp.einsum("bhqk,bhkd->bhqd", p, v).transpose(0, 2, 1, 3).reshape(B, T, D)
    x = x + (ctx @ wo + bo)

    h = ln(x, ln2s, ln2b)
    h = h @ w1 + b1
    h = _mia_gelu(h)
    h = h @ w2 + b2
    return x + h


# ---------------------------------- main ------------------------------------
if __name__ == "__main__":
    # mia_config: emb_dim=32, context_length=8, total_attention_heads=4,
    #             dropout_rate=0.0 (identity), qkv_bias=True
    B, T, D, H = 2, 8, 32, 4
    key = jax.random.PRNGKey(0)
    keys = jax.random.split(key, 16)

    def w(k, shape, scale=0.02):
        return (scale * jax.random.normal(k, shape)).astype(jnp.float32)

    params = (
        jnp.ones((1, D), jnp.float32),              # ln1 scale
        jnp.zeros((1, D), jnp.float32),             # ln1 shift
        w(keys[0], (D, D)), w(keys[1], (1, D)),     # wq, bq
        w(keys[2], (D, D)), w(keys[3], (1, D)),     # wk, bk
        w(keys[4], (D, D)), w(keys[5], (1, D)),     # wv, bv
        w(keys[6], (D, D)), w(keys[7], (1, D)),     # wo, bo
        jnp.ones((1, D), jnp.float32),              # ln2 scale
        jnp.zeros((1, D), jnp.float32),             # ln2 shift
        w(keys[8], (D, 4 * D)), w(keys[9], (1, 4 * D)),   # ffn w1, b1
        w(keys[10], (4 * D, D)), w(keys[11], (1, D)),     # ffn w2, b2
    )

    x = jax.random.normal(keys[12], (B, T, D), jnp.float32)

    out = mia_decoder_block(x, params, num_heads=H)   # bf16 MXU inputs, f32 acc
    out = jax.block_until_ready(out)

    ref = reference_block(x, params, num_heads=H)
    assert out.shape == (B, T, D)
    # bf16 MXU inputs + approx softmax reciprocal -> compare at loosened tol.
    assert jnp.allclose(out, ref, atol=1e-2, rtol=1e-2), (
        float(jnp.max(jnp.abs(out - ref))))

    print("KERNEL_OK")
</pallas_src>

<mosaic_0001>
module attributes {stable_mosaic.version = 11 : i64} {
  func.func @decoder_block_kernel(%arg0: i32, %arg1: memref<2x8x32xf32, #tpu.memory_space<vmem>>, %arg2: memref<1x32xf32, #tpu.memory_space<vmem>>, %arg3: memref<1x32xf32, #tpu.memory_space<vmem>>, %arg4: memref<32x96xf32, #tpu.memory_space<vmem>>, %arg5: memref<1x96xf32, #tpu.memory_space<vmem>>, %arg6: memref<32x32xf32, #tpu.memory_space<vmem>>, %arg7: memref<1x32xf32, #tpu.memory_space<vmem>>, %arg8: memref<1x32xf32, #tpu.memory_space<vmem>>, %arg9: memref<1x32xf32, #tpu.memory_space<vmem>>, %arg10: memref<32x128xf32, #tpu.memory_space<vmem>>, %arg11: memref<1x128xf32, #tpu.memory_space<vmem>>, %arg12: memref<128x32xf32, #tpu.memory_space<vmem>>, %arg13: memref<1x32xf32, #tpu.memory_space<vmem>>, %arg14: memref<2x8x32xf32, #tpu.memory_space<vmem>>) attributes {dimension_semantics = [#tpu.dimension_semantics<parallel>], iteration_bounds = array<i64: 1>, scalar_prefetch = 0 : i64, scratch_operands = 0 : i64, tpu.core_type = #tpu.core_type<tc>, window_params = [{transform_indices = @transform_0, window_bounds = array<i64: 2, 8, 32>}, {pipeline_mode = #tpu.pipeline_mode<synchronous>, transform_indices = @transform_1, window_bounds = array<i64: 1, 32>}, {pipeline_mode = #tpu.pipeline_mode<synchronous>, transform_indices = @transform_2, window_bounds = array<i64: 1, 32>}, {pipeline_mode = #tpu.pipeline_mode<synchronous>, transform_indices = @transform_3, window_bounds = array<i64: 32, 96>}, {pipeline_mode = #tpu.pipeline_mode<synchronous>, transform_indices = @transform_4, window_bounds = array<i64: 1, 96>}, {pipeline_mode = #tpu.pipeline_mode<synchronous>, transform_indices = @transform_5, window_bounds = array<i64: 32, 32>}, {pipeline_mode = #tpu.pipeline_mode<synchronous>, transform_indices = @transform_6, window_bounds = array<i64: 1, 32>}, {pipeline_mode = #tpu.pipeline_mode<synchronous>, transform_indices = @transform_7, window_bounds = array<i64: 1, 32>}, {pipeline_mode = #tpu.pipeline_mode<synchronous>, transform_indices = @transform_8, window_bounds = array<i64: 1, 32>}, {pipeline_mode = #tpu.pipeline_mode<synchronous>, transform_indices = @transform_9, window_bounds = array<i64: 32, 128>}, {pipeline_mode = #tpu.pipeline_mode<synchronous>, transform_indices = @transform_10, window_bounds = array<i64: 1, 128>}, {pipeline_mode = #tpu.pipeline_mode<synchronous>, transform_indices = @transform_11, window_bounds = array<i64: 128, 32>}, {pipeline_mode = #tpu.pipeline_mode<synchronous>, transform_indices = @transform_12, window_bounds = array<i64: 1, 32>}, {transform_indices = @transform_13, window_bounds = array<i64: 2, 8, 32>}]} {
    %c0 = arith.constant 0 : index
    %c0_0 = arith.constant 0 : index
    %c0_1 = arith.constant 0 : index
    %0 = vector.load %arg1[%c0, %c0_0, %c0_1] : memref<2x8x32xf32, #tpu.memory_space<vmem>>, vector<2x8x32xf32>
    %1 = vector.shape_cast %0 : vector<2x8x32xf32> to vector<16x32xf32>
    %c0_2 = arith.constant 0 : index
    %c0_3 = arith.constant 0 : index
    %2 = vector.load %arg2[%c0_2, %c0_3] : memref<1x32xf32, #tpu.memory_space<vmem>>, vector<1x32xf32>
    %c0_4 = arith.constant 0 : index
    %c0_5 = arith.constant 0 : index
    %3 = vector.load %arg3[%c0_4, %c0_5] : memref<1x32xf32, #tpu.memory_space<vmem>>, vector<1x32xf32>
    %cst = arith.constant dense<0.000000e+00> : vector<16xf32>
    %4 = vector.multi_reduction <add>, %1, %cst [1] : vector<16x32xf32> to vector<16xf32>
    %5 = vector.shape_cast %4 : vector<16xf32> to vector<16x1xf32>
    %cst_6 = arith.constant 3.200000e+01 : f32
    %6 = vector.broadcast %cst_6 : f32 to vector<16x1xf32>
    %7 = arith.divf %5, %6 : vector<16x1xf32>
    %8 = vector.broadcast %7 : vector<16x1xf32> to vector<16x32xf32>
    %9 = arith.subf %1, %8 : vector<16x32xf32>
    %10 = arith.mulf %9, %9 : vector<16x32xf32>
    %cst_7 = arith.constant dense<0.000000e+00> : vector<16xf32>
    %11 = vector.multi_reduction <add>, %10, %cst_7 [1] : vector<16x32xf32> to vector<16xf32>
    %12 = vector.shape_cast %11 : vector<16xf32> to vector<16x1xf32>
    %cst_8 = arith.constant 3.200000e+01 : f32
    %13 = vector.broadcast %cst_8 : f32 to vector<16x1xf32>
    %14 = arith.divf %12, %13 : vector<16x1xf32>
    %15 = vector.broadcast %7 : vector<16x1xf32> to vector<16x32xf32>
    %16 = arith.subf %1, %15 : vector<16x32xf32>
    %cst_9 = arith.constant 9.99999974E-6 : f32
    %17 = vector.broadcast %cst_9 : f32 to vector<16x1xf32>
    %18 = arith.addf %14, %17 : vector<16x1xf32>
    %19 = math.sqrt %18 : vector<16x1xf32>
    %20 = vector.broadcast %19 : vector<16x1xf32> to vector<16x32xf32>
    %21 = arith.divf %16, %20 : vector<16x32xf32>
    %22 = vector.broadcast %2 : vector<1x32xf32> to vector<16x32xf32>
    %23 = arith.mulf %22, %21 : vector<16x32xf32>
    %24 = vector.broadcast %3 : vector<1x32xf32> to vector<16x32xf32>
    %25 = arith.addf %23, %24 : vector<16x32xf32>
    %26 = arith.truncf %25 : vector<16x32xf32> to vector<16x32xbf16>
    %c0_10 = arith.constant 0 : index
    %c0_11 = arith.constant 0 : index
    %27 = vector.load %arg4[%c0_10, %c0_11] : memref<32x96xf32, #tpu.memory_space<vmem>>, vector<32x96xf32>
    %28 = arith.truncf %27 : vector<32x96xf32> to vector<32x96xbf16>
    %cst_12 = arith.constant dense<0.000000e+00> : vector<16x96xf32>
    %29 = tpu.matmul %26, %28, %cst_12 {dimension_numbers = #tpu.dot_dimension_numbers<[1], [0], [0], [1], [0, 0, 1, 1], [], []>} : vector<16x32xbf16>, vector<32x96xbf16>, vector<16x96xf32> -> vector<16x96xf32>
    %c0_13 = arith.constant 0 : index
    %c0_14 = arith.constant 0 : index
    %30 = vector.load %arg5[%c0_13, %c0_14] : memref<1x96xf32, #tpu.memory_space<vmem>>, vector<1x96xf32>
    %31 = vector.broadcast %30 : vector<1x96xf32> to vector<16x96xf32>
    %32 = arith.addf %29, %31 : vector<16x96xf32>
    %33 = vector.extract_strided_slice %32 {offsets = [0, 0], sizes = [16, 32], strides = [1, 1]} : vector<16x96xf32> to vector<16x32xf32>
    %34 = vector.extract_strided_slice %32 {offsets = [0, 32], sizes = [16, 32], strides = [1, 1]} : vector<16x96xf32> to vector<16x32xf32>
    %35 = vector.extract_strided_slice %32 {offsets = [0, 64], sizes = [16, 32], strides = [1, 1]} : vector<16x96xf32> to vector<16x32xf32>
    %36 = vector.extract_strided_slice %33 {offsets = [0, 0], sizes = [8, 8], strides = [1, 1]} : vector<16x32xf32> to vector<8x8xf32>
    %37 = vector.extract_strided_slice %33 {offsets = [0, 8], sizes = [8, 8], strides = [1, 1]} : vector<16x32xf32> to vector<8x8xf32>
    %38 = vector.extract_strided_slice %33 {offsets = [0, 16], sizes = [8, 8], strides = [1, 1]} : vector<16x32xf32> to vector<8x8xf32>
    %39 = vector.extract_strided_slice %33 {offsets = [0, 24], sizes = [8, 8], strides = [1, 1]} : vector<16x32xf32> to vector<8x8xf32>
    %40 = vector.extract_strided_slice %33 {offsets = [8, 0], sizes = [8, 8], strides = [1, 1]} : vector<16x32xf32> to vector<8x8xf32>
    %41 = vector.extract_strided_slice %33 {offsets = [8, 8], sizes = [8, 8], strides = [1, 1]} : vector<16x32xf32> to vector<8x8xf32>
    %42 = vector.extract_strided_slice %33 {offsets = [8, 16], sizes = [8, 8], strides = [1, 1]} : vector<16x32xf32> to vector<8x8xf32>
    %43 = vector.extract_strided_slice %33 {offsets = [8, 24], sizes = [8, 8], strides = [1, 1]} : vector<16x32xf32> to vector<8x8xf32>
    %44 = vector.shape_cast %36 : vector<8x8xf32> to vector<1x8x8xf32>
    %45 = vector.shape_cast %37 : vector<8x8xf32> to vector<1x8x8xf32>
    %46 = vector.shape_cast %38 : vector<8x8xf32> to vector<1x8x8xf32>
    %47 = vector.shape_cast %39 : vector<8x8xf32> to vector<1x8x8xf32>
    %48 = vector.shape_cast %40 : vector<8x8xf32> to vector<1x8x8xf32>
    %49 = vector.shape_cast %41 : vector<8x8xf32> to vector<1x8x8xf32>
    %50 = vector.shape_cast %42 : vector<8x8xf32> to vector<1x8x8xf32>
    %51 = vector.shape_cast %43 : vector<8x8xf32> to vector<1x8x8xf32>
    %52 = tpu.concatenate %44, %45, %46, %47, %48, %49, %50, %51 in 0 : vector<1x8x8xf32>, vector<1x8x8xf32>, vector<1x8x8xf32>, vector<1x8x8xf32>, vector<1x8x8xf32>, vector<1x8x8xf32>, vector<1x8x8xf32>, vector<1x8x8xf32> -> vector<8x8x8xf32>
    %53 = arith.truncf %52 : vector<8x8x8xf32> to vector<8x8x8xbf16>
    %54 = vector.extract_strided_slice %34 {offsets = [0, 0], sizes = [8, 8], strides = [1, 1]} : vector<16x32xf32> to vector<8x8xf32>
    %55 = vector.extract_strided_slice %34 {offsets = [0, 8], sizes = [8, 8], strides = [1, 1]} : vector<16x32xf32> to vector<8x8xf32>
    %56 = vector.extract_strided_slice %34 {offsets = [0, 16], sizes = [8, 8], strides = [1, 1]} : vector<16x32xf32> to vector<8x8xf32>
    %57 = vector.extract_strided_slice %34 {offsets = [0, 24], sizes = [8, 8], strides = [1, 1]} : vector<16x32xf32> to vector<8x8xf32>
    %58 = vector.extract_strided_slice %34 {offsets = [8, 0], sizes = [8, 8], strides = [1, 1]} : vector<16x32xf32> to vector<8x8xf32>
    %59 = vector.extract_strided_slice %34 {offsets = [8, 8], sizes = [8, 8], strides = [1, 1]} : vector<16x32xf32> to vector<8x8xf32>
    %60 = vector.extract_strided_slice %34 {offsets = [8, 16], sizes = [8, 8], strides = [1, 1]} : vector<16x32xf32> to vector<8x8xf32>
    %61 = vector.extract_strided_slice %34 {offsets = [8, 24], sizes = [8, 8], strides = [1, 1]} : vector<16x32xf32> to vector<8x8xf32>
    %62 = vector.shape_cast %54 : vector<8x8xf32> to vector<1x8x8xf32>
    %63 = vector.shape_cast %55 : vector<8x8xf32> to vector<1x8x8xf32>
    %64 = vector.shape_cast %56 : vector<8x8xf32> to vector<1x8x8xf32>
    %65 = vector.shape_cast %57 : vector<8x8xf32> to vector<1x8x8xf32>
    %66 = vector.shape_cast %58 : vector<8x8xf32> to vector<1x8x8xf32>
    %67 = vector.shape_cast %59 : vector<8x8xf32> to vector<1x8x8xf32>
    %68 = vector.shape_cast %60 : vector<8x8xf32> to vector<1x8x8xf32>
    %69 = vector.shape_cast %61 : vector<8x8xf32> to vector<1x8x8xf32>
    %70 = tpu.concatenate %62, %63, %64, %65, %66, %67, %68, %69 in 0 : vector<1x8x8xf32>, vector<1x8x8xf32>, vector<1x8x8xf32>, vector<1x8x8xf32>, vector<1x8x8xf32>, vector<1x8x8xf32>, vector<1x8x8xf32>, vector<1x8x8xf32> -> vector<8x8x8xf32>
    %71 = arith.truncf %70 : vector<8x8x8xf32> to vector<8x8x8xbf16>
    %72 = vector.extract_strided_slice %35 {offsets = [0, 0], sizes = [8, 8], strides = [1, 1]} : vector<16x32xf32> to vector<8x8xf32>
    %73 = vector.extract_strided_slice %35 {offsets = [0, 8], sizes = [8, 8], strides = [1, 1]} : vector<16x32xf32> to vector<8x8xf32>
    %74 = vector.extract_strided_slice %35 {offsets = [0, 16], sizes = [8, 8], strides = [1, 1]} : vector<16x32xf32> to vector<8x8xf32>
    %75 = vector.extract_strided_slice %35 {offsets = [0, 24], sizes = [8, 8], strides = [1, 1]} : vector<16x32xf32> to vector<8x8xf32>
    %76 = vector.extract_strided_slice %35 {offsets = [8, 0], sizes = [8, 8], strides = [1, 1]} : vector<16x32xf32> to vector<8x8xf32>
    %77 = vector.extract_strided_slice %35 {offsets = [8, 8], sizes = [8, 8], strides = [1, 1]} : vector<16x32xf32> to vector<8x8xf32>
    %78 = vector.extract_strided_slice %35 {offsets = [8, 16], sizes = [8, 8], strides = [1, 1]} : vector<16x32xf32> to vector<8x8xf32>
    %79 = vector.extract_strided_slice %35 {offsets = [8, 24], sizes = [8, 8], strides = [1, 1]} : vector<16x32xf32> to vector<8x8xf32>
    %80 = vector.shape_cast %72 : vector<8x8xf32> to vector<1x8x8xf32>
    %81 = vector.shape_cast %73 : vector<8x8xf32> to vector<1x8x8xf32>
    %82 = vector.shape_cast %74 : vector<8x8xf32> to vector<1x8x8xf32>
    %83 = vector.shape_cast %75 : vector<8x8xf32> to vector<1x8x8xf32>
    %84 = vector.shape_cast %76 : vector<8x8xf32> to vector<1x8x8xf32>
    %85 = vector.shape_cast %77 : vector<8x8xf32> to vector<1x8x8xf32>
    %86 = vector.shape_cast %78 : vector<8x8xf32> to vector<1x8x8xf32>
    %87 = vector.shape_cast %79 : vector<8x8xf32> to vector<1x8x8xf32>
    %88 = tpu.concatenate %80, %81, %82, %83, %84, %85, %86, %87 in 0 : vector<1x8x8xf32>, vector<1x8x8xf32>, vector<1x8x8xf32>, vector<1x8x8xf32>, vector<1x8x8xf32>, vector<1x8x8xf32>, vector<1x8x8xf32>, vector<1x8x8xf32> -> vector<8x8x8xf32>
    %89 = arith.truncf %88 : vector<8x8x8xf32> to vector<8x8x8xbf16>
    "tpu.trace_start"() <{level = 10 : i32, message = "gqd,gkd->gqk"}> : () -> ()
    %cst_15 = arith.constant dense<0.000000e+00> : vector<8x8x8xf32>
    %90 = tpu.matmul %53, %71, %cst_15 {dimension_numbers = #tpu.dot_dimension_numbers<[2], [2], [1], [1], [0, 0, 0, 1, 1, 1], [0], [0]>} : vector<8x8x8xbf16>, vector<8x8x8xbf16>, vector<8x8x8xf32> -> vector<8x8x8xf32>
    "tpu.trace_stop"() : () -> ()
    %91 = tpu.iota {dimensions = array<i32: 0>} : vector<8x8xi32>
    %92 = tpu.iota {dimensions = array<i32: 1>} : vector<8x8xi32>
    %93 = arith.cmpi sle, %92, %91 : vector<8x8xi32>
    %94 = vector.shape_cast %93 : vector<8x8xi1> to vector<1x8x8xi1>
    %cst_16 = arith.constant -1.000000e+30 : f32
    %95 = vector.shape_cast %94 : vector<1x8x8xi1> to vector<1x8x8xi1>
    %96 = vector.broadcast %95 : vector<1x8x8xi1> to vector<8x8x8xi1>
    %97 = vector.broadcast %cst_16 : f32 to vector<8x8x8xf32>
    %98 = arith.select %96, %90, %97 : vector<8x8x8xi1>, vector<8x8x8xf32>
    %cst_17 = arith.constant dense<0xFF800000> : vector<8x8xf32>
    %99 = vector.multi_reduction <maximumf>, %98, %cst_17 [2] : vector<8x8x8xf32> to vector<8x8xf32>
    %100 = vector.shape_cast %99 : vector<8x8xf32> to vector<8x8x1xf32>
    %101 = vector.broadcast %100 : vector<8x8x1xf32> to vector<8x8x8xf32>
    %102 = arith.subf %98, %101 : vector<8x8x8xf32>
    %103 = math.exp %102 : vector<8x8x8xf32>
    %cst_18 = arith.constant dense<0.000000e+00> : vector<8x8xf32>
    %104 = vector.multi_reduction <add>, %103, %cst_18 [2] : vector<8x8x8xf32> to vector<8x8xf32>
    %105 = vector.shape_cast %104 : vector<8x8xf32> to vector<8x8x1xf32>
    %106 = tpu.reciprocal %105 {approx = true} : vector<8x8x1xf32> -> vector<8x8x1xf32>
    %107 = vector.broadcast %106 : vector<8x8x1xf32> to vector<8x8x8xf32>
    %108 = arith.mulf %103, %107 : vector<8x8x8xf32>
    %109 = arith.truncf %108 : vector<8x8x8xf32> to vector<8x8x8xbf16>
    "tpu.trace_start"() <{level = 10 : i32, message = "gqk,gkd->gqd"}> : () -> ()
    %cst_19 = arith.constant dense<0.000000e+00> : vector<8x8x8xf32>
    %110 = tpu.matmul %109, %89, %cst_19 {dimension_numbers = #tpu.dot_dimension_numbers<[2], [1], [1], [2], [0, 0, 0, 1, 1, 2], [0], [0]>} : vector<8x8x8xbf16>, vector<8x8x8xbf16>, vector<8x8x8xf32> -> vector<8x8x8xf32>
    "tpu.trace_stop"() : () -> ()
    %111 = vector.extract_strided_slice %110 {offsets = [0, 0, 0], sizes = [1, 8, 8], strides = [1, 1, 1]} : vector<8x8x8xf32> to vector<1x8x8xf32>
    %112 = vector.shape_cast %111 : vector<1x8x8xf32> to vector<8x8xf32>
    %113 = vector.extract_strided_slice %110 {offsets = [1, 0, 0], sizes = [1, 8, 8], strides = [1, 1, 1]} : vector<8x8x8xf32> to vector<1x8x8xf32>
    %114 = vector.shape_cast %113 : vector<1x8x8xf32> to vector<8x8xf32>
    %115 = vector.extract_strided_slice %110 {offsets = [2, 0, 0], sizes = [1, 8, 8], strides = [1, 1, 1]} : vector<8x8x8xf32> to vector<1x8x8xf32>
    %116 = vector.shape_cast %115 : vector<1x8x8xf32> to vector<8x8xf32>
    %117 = vector.extract_strided_slice %110 {offsets = [3, 0, 0], sizes = [1, 8, 8], strides = [1, 1, 1]} : vector<8x8x8xf32> to vector<1x8x8xf32>
    %118 = vector.shape_cast %117 : vector<1x8x8xf32> to vector<8x8xf32>
    %119 = tpu.concatenate %112, %114, %116, %118 in 1 : vector<8x8xf32>, vector<8x8xf32>, vector<8x8xf32>, vector<8x8xf32> -> vector<8x32xf32>
    %120 = vector.extract_strided_slice %110 {offsets = [4, 0, 0], sizes = [1, 8, 8], strides = [1, 1, 1]} : vector<8x8x8xf32> to vector<1x8x8xf32>
    %121 = vector.shape_cast %120 : vector<1x8x8xf32> to vector<8x8xf32>
    %122 = vector.extract_strided_slice %110 {offsets = [5, 0, 0], sizes = [1, 8, 8], strides = [1, 1, 1]} : vector<8x8x8xf32> to vector<1x8x8xf32>
    %123 = vector.shape_cast %122 : vector<1x8x8xf32> to vector<8x8xf32>
    %124 = vector.extract_strided_slice %110 {offsets = [6, 0, 0], sizes = [1, 8, 8], strides = [1, 1, 1]} : vector<8x8x8xf32> to vector<1x8x8xf32>
    %125 = vector.shape_cast %124 : vector<1x8x8xf32> to vector<8x8xf32>
    %126 = vector.extract_strided_slice %110 {offsets = [7, 0, 0], sizes = [1, 8, 8], strides = [1, 1, 1]} : vector<8x8x8xf32> to vector<1x8x8xf32>
    %127 = vector.shape_cast %126 : vector<1x8x8xf32> to vector<8x8xf32>
    %128 = tpu.concatenate %121, %123, %125, %127 in 1 : vector<8x8xf32>, vector<8x8xf32>, vector<8x8xf32>, vector<8x8xf32> -> vector<8x32xf32>
    %129 = tpu.concatenate %119, %128 in 0 : vector<8x32xf32>, vector<8x32xf32> -> vector<16x32xf32>
    %130 = arith.truncf %129 : vector<16x32xf32> to vector<16x32xbf16>
    %c0_20 = arith.constant 0 : index
    %c0_21 = arith.constant 0 : index
    %131 = vector.load %arg6[%c0_20, %c0_21] : memref<32x32xf32, #tpu.memory_space<vmem>>, vector<32x32xf32>
    %132 = arith.truncf %131 : vector<32x32xf32> to vector<32x32xbf16>
    %cst_22 = arith.constant dense<0.000000e+00> : vector<16x32xf32>
    %133 = tpu.matmul %130, %132, %cst_22 {dimension_numbers = #tpu.dot_dimension_numbers<[1], [0], [0], [1], [0, 0, 1, 1], [], []>} : vector<16x32xbf16>, vector<32x32xbf16>, vector<16x32xf32> -> vector<16x32xf32>
    %c0_23 = arith.constant 0 : index
    %c0_24 = arith.constant 0 : index
    %134 = vector.load %arg7[%c0_23, %c0_24] : memref<1x32xf32, #tpu.memory_space<vmem>>, vector<1x32xf32>
    %135 = vector.broadcast %134 : vector<1x32xf32> to vector<16x32xf32>
    %136 = arith.addf %133, %135 : vector<16x32xf32>
    %137 = arith.addf %1, %136 : vector<16x32xf32>
    %c0_25 = arith.constant 0 : index
    %c0_26 = arith.constant 0 : index
    %138 = vector.load %arg8[%c0_25, %c0_26] : memref<1x32xf32, #tpu.memory_space<vmem>>, vector<1x32xf32>
    %c0_27 = arith.constant 0 : index
    %c0_28 = arith.constant 0 : index
    %139 = vector.load %arg9[%c0_27, %c0_28] : memref<1x32xf32, #tpu.memory_space<vmem>>, vector<1x32xf32>
    %cst_29 = arith.constant dense<0.000000e+00> : vector<16xf32>
    %140 = vector.multi_reduction <add>, %137, %cst_29 [1] : vector<16x32xf32> to vector<16xf32>
    %141 = vector.shape_cast %140 : vector<16xf32> to vector<16x1xf32>
    %cst_30 = arith.constant 3.200000e+01 : f32
    %142 = vector.broadcast %cst_30 : f32 to vector<16x1xf32>
    %143 = arith.divf %141, %142 : vector<16x1xf32>
    %144 = vector.broadcast %143 : vector<16x1xf32> to vector<16x32xf32>
    %145 = arith.subf %137, %144 : vector<16x32xf32>
    %146 = arith.mulf %145, %145 : vector<16x32xf32>
    %cst_31 = arith.constant dense<0.000000e+00> : vector<16xf32>
    %147 = vector.multi_reduction <add>, %146, %cst_31 [1] : vector<16x32xf32> to vector<16xf32>
    %148 = vector.shape_cast %147 : vector<16xf32> to vector<16x1xf32>
    %cst_32 = arith.constant 3.200000e+01 : f32
    %149 = vector.broadcast %cst_32 : f32 to vector<16x1xf32>
    %150 = arith.divf %148, %149 : vector<16x1xf32>
    %151 = vector.broadcast %143 : vector<16x1xf32> to vector<16x32xf32>
    %152 = arith.subf %137, %151 : vector<16x32xf32>
    %cst_33 = arith.constant 9.99999974E-6 : f32
    %153 = vector.broadcast %cst_33 : f32 to vector<16x1xf32>
    %154 = arith.addf %150, %153 : vector<16x1xf32>
    %155 = math.sqrt %154 : vector<16x1xf32>
    %156 = vector.broadcast %155 : vector<16x1xf32> to vector<16x32xf32>
    %157 = arith.divf %152, %156 : vector<16x32xf32>
    %158 = vector.broadcast %138 : vector<1x32xf32> to vector<16x32xf32>
    %159 = arith.mulf %158, %157 : vector<16x32xf32>
    %160 = vector.broadcast %139 : vector<1x32xf32> to vector<16x32xf32>
    %161 = arith.addf %159, %160 : vector<16x32xf32>
    %162 = arith.truncf %161 : vector<16x32xf32> to vector<16x32xbf16>
    %c0_34 = arith.constant 0 : index
    %c0_35 = arith.constant 0 : index
    %163 = vector.load %arg10[%c0_34, %c0_35] : memref<32x128xf32, #tpu.memory_space<vmem>>, vector<32x128xf32>
    %164 = arith.truncf %163 : vector<32x128xf32> to vector<32x128xbf16>
    %cst_36 = arith.constant dense<0.000000e+00> : vector<16x128xf32>
    %165 = tpu.matmul %162, %164, %cst_36 {dimension_numbers = #tpu.dot_dimension_numbers<[1], [0], [0], [1], [0, 0, 1, 1], [], []>} : vector<16x32xbf16>, vector<32x128xbf16>, vector<16x128xf32> -> vector<16x128xf32>
    %c0_37 = arith.constant 0 : index
    %c0_38 = arith.constant 0 : index
    %166 = vector.load %arg11[%c0_37, %c0_38] : memref<1x128xf32, #tpu.memory_space<vmem>>, vector<1x128xf32>
    %167 = vector.broadcast %166 : vector<1x128xf32> to vector<16x128xf32>
    %168 = arith.addf %165, %167 : vector<16x128xf32>
    %cst_39 = arith.constant 5.000000e-01 : f32
    %169 = vector.broadcast %cst_39 : f32 to vector<16x128xf32>
    %170 = arith.mulf %169, %168 : vector<16x128xf32>
    %171 = arith.mulf %168, %168 : vector<16x128xf32>
    %172 = arith.mulf %168, %171 : vector<16x128xf32>
    %cst_40 = arith.constant 4.471500e-02 : f32
    %173 = vector.broadcast %cst_40 : f32 to vector<16x128xf32>
    %174 = arith.mulf %173, %172 : vector<16x128xf32>
    %175 = arith.addf %168, %174 : vector<16x128xf32>
    %cst_41 = arith.constant 0.797884583 : f32
    %176 = vector.broadcast %cst_41 : f32 to vector<16x128xf32>
    %177 = arith.mulf %176, %175 : vector<16x128xf32>
    %178 = math.tanh %177 : vector<16x128xf32>
    %cst_42 = arith.constant 1.000000e+00 : f32
    %179 = vector.broadcast %cst_42 : f32 to vector<16x128xf32>
    %180 = arith.addf %179, %178 : vector<16x128xf32>
    %181 = arith.mulf %170, %180 : vector<16x128xf32>
    %182 = arith.truncf %181 : vector<16x128xf32> to vector<16x128xbf16>
    %c0_43 = arith.constant 0 : index
    %c0_44 = arith.constant 0 : index
    %183 = vector.load %arg12[%c0_43, %c0_44] : memref<128x32xf32, #tpu.memory_space<vmem>>, vector<128x32xf32>
    %184 = arith.truncf %183 : vector<128x32xf32> to vector<128x32xbf16>
    %cst_45 = arith.constant dense<0.000000e+00> : vector<16x32xf32>
    %185 = tpu.matmul %182, %184, %cst_45 {dimension_numbers = #tpu.dot_dimension_numbers<[1], [0], [0], [1], [0, 0, 1, 1], [], []>} : vector<16x128xbf16>, vector<128x32xbf16>, vector<16x32xf32> -> vector<16x32xf32>
    %c0_46 = arith.constant 0 : index
    %c0_47 = arith.constant 0 : index
    %186 = vector.load %arg13[%c0_46, %c0_47] : memref<1x32xf32, #tpu.memory_space<vmem>>, vector<1x32xf32>
    %187 = vector.broadcast %186 : vector<1x32xf32> to vector<16x32xf32>
    %188 = arith.addf %185, %187 : vector<16x32xf32>
    %189 = arith.addf %137, %188 : vector<16x32xf32>
    %190 = vector.shape_cast %189 : vector<16x32xf32> to vector<2x8x32xf32>
    %c0_48 = arith.constant 0 : index
    %c0_49 = arith.constant 0 : index
    %c0_50 = arith.constant 0 : index
    %191 = vector.load %arg14[%c0_48, %c0_49, %c0_50] : memref<2x8x32xf32, #tpu.memory_space<vmem>>, vector<2x8x32xf32>
    tpu.vector_store %arg14[%c0_48, %c0_49, %c0_50], %190 {strides = array<i32>} : memref<2x8x32xf32, #tpu.memory_space<vmem>>, vector<2x8x32xf32>,
    return
  }
  func.func @transform_0(%arg0: i32) -> (i32, i32, i32) {
    %c0_i32 = arith.constant 0 : i32
    %c0_i32_0 = arith.constant 0 : i32
    %c0_i32_1 = arith.constant 0 : i32
    return %arg0, %c0_i32, %c0_i32_0 : i32, i32, i32
  }
  func.func @transform_1(%arg0: i32) -> (i32, i32) {
    %c0_i32 = arith.constant 0 : i32
    %c0_i32_0 = arith.constant 0 : i32
    %c0_i32_1 = arith.constant 0 : i32
    return %c0_i32, %c0_i32_0 : i32, i32
  }
  func.func @transform_2(%arg0: i32) -> (i32, i32) {
    %c0_i32 = arith.constant 0 : i32
    %c0_i32_0 = arith.constant 0 : i32
    %c0_i32_1 = arith.constant 0 : i32
    return %c0_i32, %c0_i32_0 : i32, i32
  }
  func.func @transform_3(%arg0: i32) -> (i32, i32) {
    %c0_i32 = arith.constant 0 : i32
    %c0_i32_0 = arith.constant 0 : i32
    %c0_i32_1 = arith.constant 0 : i32
    return %c0_i32, %c0_i32_0 : i32, i32
  }
  func.func @transform_4(%arg0: i32) -> (i32, i32) {
    %c0_i32 = arith.constant 0 : i32
    %c0_i32_0 = arith.constant 0 : i32
    %c0_i32_1 = arith.constant 0 : i32
    return %c0_i32, %c0_i32_0 : i32, i32
  }
  func.func @transform_5(%arg0: i32) -> (i32, i32) {
    %c0_i32 = arith.constant 0 : i32
    %c0_i32_0 = arith.constant 0 : i32
    %c0_i32_1 = arith.constant 0 : i32
    return %c0_i32, %c0_i32_0 : i32, i32
  }
  func.func @transform_6(%arg0: i32) -> (i32, i32) {
    %c0_i32 = arith.constant 0 : i32
    %c0_i32_0 = arith.constant 0 : i32
    %c0_i32_1 = arith.constant 0 : i32
    return %c0_i32, %c0_i32_0 : i32, i32
  }
  func.func @transform_7(%arg0: i32) -> (i32, i32) {
    %c0_i32 = arith.constant 0 : i32
    %c0_i32_0 = arith.constant 0 : i32
    %c0_i32_1 = arith.constant 0 : i32
    return %c0_i32, %c0_i32_0 : i32, i32
  }
  func.func @transform_8(%arg0: i32) -> (i32, i32) {
    %c0_i32 = arith.constant 0 : i32
    %c0_i32_0 = arith.constant 0 : i32
    %c0_i32_1 = arith.constant 0 : i32
    return %c0_i32, %c0_i32_0 : i32, i32
  }
  func.func @transform_9(%arg0: i32) -> (i32, i32) {
    %c0_i32 = arith.constant 0 : i32
    %c0_i32_0 = arith.constant 0 : i32
    %c0_i32_1 = arith.constant 0 : i32
    return %c0_i32, %c0_i32_0 : i32, i32
  }
  func.func @transform_10(%arg0: i32) -> (i32, i32) {
    %c0_i32 = arith.constant 0 : i32
    %c0_i32_0 = arith.constant 0 : i32
    %c0_i32_1 = arith.constant 0 : i32
    return %c0_i32, %c0_i32_0 : i32, i32
  }
  func.func @transform_11(%arg0: i32) -> (i32, i32) {
    %c0_i32 = arith.constant 0 : i32
    %c0_i32_0 = arith.constant 0 : i32
    %c0_i32_1 = arith.constant 0 : i32
    return %c0_i32, %c0_i32_0 : i32, i32
  }
  func.func @transform_12(%arg0: i32) -> (i32, i32) {
    %c0_i32 = arith.constant 0 : i32
    %c0_i32_0 = arith.constant 0 : i32
    %c0_i32_1 = arith.constant 0 : i32
    return %c0_i32, %c0_i32_0 : i32, i32
  }
  func.func @transform_13(%arg0: i32) -> (i32, i32, i32) {
    %c0_i32 = arith.constant 0 : i32
    %c0_i32_0 = arith.constant 0 : i32
    %c0_i32_1 = arith.constant 0 : i32
    return %arg0, %c0_i32, %c0_i32_0 : i32, i32, i32
  }
}

</mosaic_0001>

<bundles_post_ra>
// kernel: tpu_custom_call.1
= control target key start
LH: loop header
LB: loop body
LE: loop exit
PB: predicated region body
PF: predicated region fallthrough
CT: control target
= control target key end

     0   :  { %18 = vsyncpa [#allocation3], 0  ;;  %s2761_s0 = inlined_call_operand.hbm [shape: f32[2,8,32], index: 0, kind: input, shape index: {}]   ;;  %s2762_s1 = inlined_call_operand.hbm [shape: f32[1,32], index: 1, kind: input, shape index: {}]   ;;  %s2763_s2 = inlined_call_operand.hbm [shape: f32[1,32], index: 2, kind: input, shape index: {}]   ;;  %s2764_s3 = inlined_call_operand.hbm [shape: f32[32,96], index: 3, kind: input, shape index: {}]   ;;  %s2765_s4 = inlined_call_operand.hbm [shape: f32[1,96], index: 4, kind: input, shape index: {}]   ;;  %s2766_s5 = inlined_call_operand.hbm [shape: f32[32,32], index: 5, kind: input, shape index: {}]   ;;  %s2767_s6 = inlined_call_operand.hbm [shape: f32[1,32], index: 6, kind: input, shape index: {}]   ;;  %s2768_s7 = inlined_call_operand.hbm [shape: f32[1,32], index: 7, kind: input, shape index: {}]   ;;  %s2769_s8 = inlined_call_operand.hbm [shape: f32[1,32], index: 8, kind: input, shape index: {}]   ;;  %s2770_s9 = inlined_call_operand.hbm [shape: f32[32,128], index: 9, kind: input, shape index: {}]   ;;  %s2771_s10 = inlined_call_operand.hbm [shape: f32[1,128], index: 10, kind: input, shape index: {}]   ;;  %s2772_s11 = inlined_call_operand.hbm [shape: f32[128,32], index: 11, kind: input, shape index: {}]   ;;  %s2773_s12 = inlined_call_operand.hbm [shape: f32[1,32], index: 12, kind: input, shape index: {}]   ;;  %s2774_s13 = inlined_call_operand.hbm [shape: f32[2,8,32], index: 13, kind: output, shape index: {}]  }
   0x1   :  { %19 = vsyncpa [#allocation6], 0 }
   0x2   :  { %20 = vsyncpa [#allocation9], 0 }
   0x3   :  { %21 = vsyncpa [#allocation12], 0 }
   0x4   :  { %22 = vsyncpa [#allocation15], 0 }
   0x5   :  { %23 = vsyncpa [#allocation18], 0 }
   0x6   :  { %24 = vsyncpa [#allocation21], 0 }
   0x7   :  { %25 = vsyncpa [#allocation4], 0  ;;  %s2202_s25 = smov [#allocation5]   ;;  %s1878_s29 = scalar_lea.hbm %s2762_s1, 16 }
   0x8   :  { %s44_s26 = sshll.u32 %s2202_s25, 4  ;;  %p1879_p0 = scmp.ne.s32.totalorder %s2762_s1, %s1878_s29  ;;  %s45_s26 = int_to_ptr.vmem [resolvable:$true] %s44_s26 }
   0x9   :  { %p1882_p1 = scmp.lt.u32.totalorder %s1878_s29, %s2762_s1 }
   0xb   :  { %p1884_p2 = pnand %p1882_p1, %p1879_p0 }
   0xd   :  { %1887 = shalt.err (!%p1884_p2)
}
   0xe   :  { %s1888_s17 = scalar_lea.vmem %s45_s26, 16  ;;  %s1892_s18 = scalar_lea.vmem %s45_s26, 32 }
   0xf   :  { %p1889_p3 = scmp.ne.s32.totalorder %s45_s26, %s1888_s17  ;;  %p1893_p4 = scmp.lt.s32.totalorder %s45_s26, %s45_s26 }
  0x10   :  { %p1894_p5 = scmp.lt.s32.totalorder %s1892_s18, %s1888_s17 }
  0x12   :  { %p1895_p6 = por %p1894_p5, %p1893_p4 }
  0x14   :  { %p1896_p7 = pnand %p1895_p6, %p1889_p3 }
  0x16   :  { %1899 = shalt.err (!%p1896_p7)
}
  0x17   :  { %47 = dma.hbm_to_vmem [thread:$0]  %s2762_s1, 16, %s45_s26, [#allocation6]  }
  0x18   :  { %s2203_s21 = smov [#allocation8]   ;;  %s2204_s23 = smov [#allocation11]  }
  0x19   :  { %s63_s22 = sshll.u32 %s2203_s21, 4  ;;  %s85_s24 = sshll.u32 %s2204_s23, 4  ;;  %s64_s22 = int_to_ptr.vmem [resolvable:$true] %s63_s22  ;;  %s86_s24 = int_to_ptr.vmem [resolvable:$true] %s85_s24 }
  0x1a   :  { %s1900_s28 = scalar_lea.hbm %s2764_s3, 512 }
  0x1b   :  { %p1901_p8 = scmp.ne.s32.totalorder %s2764_s3, %s1900_s28  ;;  %p1904_p9 = scmp.lt.u32.totalorder %s1900_s28, %s2764_s3 }
  0x1d   :  { %p1906_p10 = pnand %p1904_p9, %p1901_p8 }
  0x1f   :  { %1909 = shalt.err (!%p1906_p10)
}
  0x20   :  { %s1910_s1 = scalar_lea.vmem %s64_s22, 512  ;;  %p1915_p12 = scmp.lt.s32.totalorder %s64_s22, %s64_s22 }
  0x21   :  { %p1911_p11 = scmp.ne.s32.totalorder %s64_s22, %s1910_s1  ;;  %p1916_p13 = scmp.lt.s32.totalorder %s1910_s1, %s1910_s1 }
  0x23   :  { %p1917_p0 = por %p1916_p13, %p1915_p12 }
  0x25   :  { %p1918_p1 = pnand %p1917_p0, %p1911_p11 }
  0x27   :  { %1921 = shalt.err (!%p1918_p1)
}
  0x28   :  { %s2205_s26 = smov 128   ;;  %s2206_s16 = smov 8  }
  0x29   :  { %69 = dma.hbm_to_vmem [thread:$0]  %s2764_s3, 512, %s64_s22, [#allocation9], %s2205_s26, %s2205_s26, %s2206_s16  }
  0x2a   :  { %s1922_s21 = scalar_lea.hbm %s2766_s5, 512 }
  0x2b   :  { %p1923_p2 = scmp.ne.s32.totalorder %s2766_s5, %s1922_s21  ;;  %p1926_p3 = scmp.lt.u32.totalorder %s1922_s21, %s2766_s5 }
  0x2d   :  { %p1928_p4 = pnand %p1926_p3, %p1923_p2 }
  0x2f   :  { %1931 = shalt.err (!%p1928_p4)
}
  0x30   :  { %s1932_s29 = scalar_lea.vmem %s86_s24, 512  ;;  %p1937_p6 = scmp.lt.s32.totalorder %s86_s24, %s86_s24 }
  0x31   :  { %p1933_p5 = scmp.ne.s32.totalorder %s86_s24, %s1932_s29  ;;  %p1938_p7 = scmp.lt.s32.totalorder %s1932_s29, %s1932_s29 }
  0x33   :  { %p1939_p8 = por %p1938_p7, %p1937_p6 }
  0x35   :  { %p1940_p9 = pnand %p1939_p8, %p1933_p5 }
  0x37   :  { %1943 = shalt.err (!%p1940_p9)
}
  0x38   :  { %91 = dma.hbm_to_vmem [thread:$0]  %s2766_s5, 512, %s86_s24, [#allocation12], %s2205_s26, %s2205_s26, %s2206_s16  }
  0x39   :  { %s2207_s30 = smov [#allocation14]   ;;  %s2208_s15 = smov [#allocation17]  }
  0x3a   :  { %s108_s14 = sshll.u32 %s2207_s30, 4  ;;  %s127_s1 = sshll.u32 %s2208_s15, 4  ;;  %s109_s14 = int_to_ptr.vmem [resolvable:$true] %s108_s14  ;;  %s128_s1 = int_to_ptr.vmem [resolvable:$true] %s127_s1 }
  0x3b   :  { %s1944_s19 = scalar_lea.hbm %s2768_s7, 16 }
  0x3c   :  { %p1945_p10 = scmp.ne.s32.totalorder %s2768_s7, %s1944_s19  ;;  %p1948_p11 = scmp.lt.u32.totalorder %s1944_s19, %s2768_s7 }
  0x3e   :  { %p1950_p12 = pnand %p1948_p11, %p1945_p10 }
  0x40   :  { %1953 = shalt.err (!%p1950_p12)
}
  0x41   :  { %s1954_s5 = scalar_lea.vmem %s109_s14, 16  ;;  %s1958_s24 = scalar_lea.vmem %s109_s14, 32 }
  0x42   :  { %p1955_p13 = scmp.ne.s32.totalorder %s109_s14, %s1954_s5  ;;  %p1959_p0 = scmp.lt.s32.totalorder %s109_s14, %s109_s14 }
  0x43   :  { %p1960_p1 = scmp.lt.s32.totalorder %s1958_s24, %s1954_s5 }
  0x45   :  { %p1961_p2 = por %p1960_p1, %p1959_p0 }
  0x47   :  { %p1962_p3 = pnand %p1961_p2, %p1955_p13 }
  0x49   :  { %1965 = shalt.err (!%p1962_p3)
}
  0x4a   :  { %111 = dma.hbm_to_vmem [thread:$0]  %s2768_s7, 16, %s109_s14, [#allocation15]  }
  0x4b   :  { %s1966_s22 = scalar_lea.hbm %s2770_s9, 512 }
  0x4c   :  { %p1967_p4 = scmp.ne.s32.totalorder %s2770_s9, %s1966_s22  ;;  %p1970_p5 = scmp.lt.u32.totalorder %s1966_s22, %s2770_s9 }
  0x4e   :  { %p1972_p6 = pnand %p1970_p5, %p1967_p4 }
  0x50   :  { %1975 = shalt.err (!%p1972_p6)
}
  0x51   :  { %s1976_s19 = scalar_lea.vmem %s128_s1, 512  ;;  %p1981_p8 = scmp.lt.s32.totalorder %s128_s1, %s128_s1 }
  0x52   :  { %p1977_p7 = scmp.ne.s32.totalorder %s128_s1, %s1976_s19  ;;  %p1982_p9 = scmp.lt.s32.totalorder %s1976_s19, %s1976_s19 }
  0x54   :  { %p1983_p10 = por %p1982_p9, %p1981_p8 }
  0x56   :  { %p1984_p11 = pnand %p1983_p10, %p1977_p7 }
  0x58   :  { %1987 = shalt.err (!%p1984_p11)
}
  0x59   :  { %133 = dma.hbm_to_vmem [thread:$0]  %s2770_s9, 512, %s128_s1, [#allocation18], %s2205_s26, %s2205_s26, %s2206_s16  }
  0x5a   :  { %s2209_s20 = smov [#allocation20]   ;;  %s2210_s23 = smov [#allocation2]  }
  0x5b   :  { %s149_s21 = sshll.u32 %s2209_s20, 4  ;;  %s31_s25 = sshll.u32 %s2210_s23, 4  ;;  %s150_s21 = int_to_ptr.vmem [resolvable:$true] %s149_s21  ;;  %s32_s25 = int_to_ptr.vmem [resolvable:$true] %s31_s25 }
  0x5c   :  { %s1988_s27 = scalar_lea.hbm %s2772_s11, 2048 }
  0x5d   :  { %p1989_p12 = scmp.ne.s32.totalorder %s2772_s11, %s1988_s27  ;;  %p1992_p13 = scmp.lt.u32.totalorder %s1988_s27, %s2772_s11 }
  0x5f   :  { %p1994_p0 = pnand %p1992_p13, %p1989_p12 }
  0x61   :  { %1997 = shalt.err (!%p1994_p0)
}
  0x62   :  { %s1998_s9 = scalar_lea.vmem %s150_s21, 2048  ;;  %p2003_p2 = scmp.lt.s32.totalorder %s150_s21, %s150_s21 }
  0x63   :  { %p1999_p1 = scmp.ne.s32.totalorder %s150_s21, %s1998_s9  ;;  %p2004_p3 = scmp.lt.s32.totalorder %s1998_s9, %s1998_s9 }
  0x65   :  { %p2005_p4 = por %p2004_p3, %p2003_p2 }
  0x67   :  { %p2006_p5 = pnand %p2005_p4, %p1999_p1 }
  0x69   :  { %2009 = shalt.err (!%p2006_p5)
}
  0x6a   :  { %155 = dma.hbm_to_vmem [thread:$0]  %s2772_s11, 2048, %s150_s21, [#allocation21], %s2205_s26, %s2205_s26, %s2206_s16  }
  0x6b   :  { %s2010_s18 = scalar_lea.hbm %s2761_s0, 256 }
  0x6c   :  { %p2011_p6 = scmp.ne.s32.totalorder %s2761_s0, %s2010_s18  ;;  %p2014_p7 = scmp.lt.u32.totalorder %s2010_s18, %s2761_s0 }
  0x6e   :  { %p2016_p8 = pnand %p2014_p7, %p2011_p6 }
  0x70   :  { %2019 = shalt.err (!%p2016_p8)
}
  0x71   :  { %s2020_s23 = scalar_lea.vmem %s32_s25, 256  ;;  %p2025_p10 = scmp.lt.s32.totalorder %s32_s25, %s32_s25 }
  0x72   :  { %p2021_p9 = scmp.ne.s32.totalorder %s32_s25, %s2020_s23  ;;  %p2026_p11 = scmp.lt.s32.totalorder %s2020_s23, %s2020_s23 }
  0x74   :  { %p2027_p12 = por %p2026_p11, %p2025_p10 }
  0x76   :  { %p2028_p13 = pnand %p2027_p12, %p2021_p9 }
  0x78   :  { %2031 = shalt.err (!%p2028_p13)
}
  0x79   :  { %37 = dma.hbm_to_vmem [thread:$0]  %s2761_s0, 256, %s32_s25, [#allocation3], %s2205_s26, %s2205_s26, %s2206_s16  }
  0x7a   :  { %s2211_s5 = smov [#allocation7]   ;;  %s2212_s27 = smov [#allocation10]  }
  0x7b   :  { %s54_s24 = sshll.u32 %s2211_s5, 4  ;;  %s76_s28 = sshll.u32 %s2212_s27, 4  ;;  %s55_s24 = int_to_ptr.vmem [resolvable:$true] %s54_s24  ;;  %s77_s28 = int_to_ptr.vmem [resolvable:$true] %s76_s28 }
  0x7c   :  { %s2032_s22 = scalar_lea.hbm %s2763_s2, 16 }
  0x7d   :  { %p2033_p0 = scmp.ne.s32.totalorder %s2763_s2, %s2032_s22  ;;  %p2036_p1 = scmp.lt.u32.totalorder %s2032_s22, %s2763_s2 }
  0x7f   :  { %p2038_p2 = pnand %p2036_p1, %p2033_p0 }
  0x81   :  { %2041 = shalt.err (!%p2038_p2)
}
  0x82   :  { %s2042_s0 = scalar_lea.vmem %s55_s24, 16  ;;  %s2046_s25 = scalar_lea.vmem %s55_s24, 32 }
  0x83   :  { %p2043_p3 = scmp.ne.s32.totalorder %s55_s24, %s2042_s0  ;;  %p2047_p4 = scmp.lt.s32.totalorder %s55_s24, %s55_s24 }
  0x84   :  { %p2048_p5 = scmp.lt.s32.totalorder %s2046_s25, %s2042_s0 }
  0x86   :  { %p2049_p6 = por %p2048_p5, %p2047_p4 }
  0x88   :  { %p2050_p7 = pnand %p2049_p6, %p2043_p3 }
  0x8a   :  { %2053 = shalt.err (!%p2050_p7)
}
  0x8b   :  { %57 = dma.hbm_to_vmem [thread:$0]  %s2763_s2, 16, %s55_s24, [#allocation6]  }
  0x8c   :  { %s2054_s14 = scalar_lea.hbm %s2765_s4, 16 }
  0x8d   :  { %p2055_p8 = scmp.ne.s32.totalorder %s2765_s4, %s2054_s14  ;;  %p2058_p9 = scmp.lt.u32.totalorder %s2054_s14, %s2765_s4 }
  0x8f   :  { %p2060_p10 = pnand %p2058_p9, %p2055_p8 }
  0x91   :  { %2063 = shalt.err (!%p2060_p10)
}
  0x92   :  { %s2064_s5 = scalar_lea.vmem %s77_s28, 16  ;;  %s2068_s27 = scalar_lea.vmem %s77_s28, 32 }
  0x93   :  { %p2065_p11 = scmp.ne.s32.totalorder %s77_s28, %s2064_s5  ;;  %p2069_p12 = scmp.lt.s32.totalorder %s77_s28, %s77_s28 }
  0x94   :  { %p2070_p13 = scmp.lt.s32.totalorder %s2068_s27, %s2064_s5 }
  0x96   :  { %p2071_p0 = por %p2070_p13, %p2069_p12 }
  0x98   :  { %p2072_p1 = pnand %p2071_p0, %p2065_p11 }
  0x9a   :  { %2075 = shalt.err (!%p2072_p1)
}
  0x9b   :  { %79 = dma.hbm_to_vmem [thread:$0]  %s2765_s4, 16, %s77_s28, [#allocation9]  }
  0x9c   :  { %s2213_s29 = smov [#allocation13]   ;;  %s2214_s22 = smov [#allocation16]  }
  0x9d   :  { %s98_s3 = sshll.u32 %s2213_s29, 4  ;;  %s118_s9 = sshll.u32 %s2214_s22, 4  ;;  %s99_s3 = int_to_ptr.vmem [resolvable:$true] %s98_s3  ;;  %s119_s9 = int_to_ptr.vmem [resolvable:$true] %s118_s9 }
  0x9e   :  { %s2076_s15 = scalar_lea.hbm %s2767_s6, 16 }
  0x9f   :  { %p2077_p2 = scmp.ne.s32.totalorder %s2767_s6, %s2076_s15  ;;  %p2080_p3 = scmp.lt.u32.totalorder %s2076_s15, %s2767_s6 }
  0xa1   :  { %p2082_p4 = pnand %p2080_p3, %p2077_p2 }
  0xa3   :  { %2085 = shalt.err (!%p2082_p4)
}
  0xa4   :  { %s2086_s4 = scalar_lea.vmem %s99_s3, 16  ;;  %s2090_s28 = scalar_lea.vmem %s99_s3, 32 }
  0xa5   :  { %p2087_p5 = scmp.ne.s32.totalorder %s99_s3, %s2086_s4  ;;  %p2091_p6 = scmp.lt.s32.totalorder %s99_s3, %s99_s3 }
  0xa6   :  { %p2092_p7 = scmp.lt.s32.totalorder %s2090_s28, %s2086_s4 }
  0xa8   :  { %p2093_p8 = por %p2092_p7, %p2091_p6 }
  0xaa   :  { %p2094_p9 = pnand %p2093_p8, %p2087_p5 }
  0xac   :  { %2097 = shalt.err (!%p2094_p9)
}
  0xad   :  { %101 = dma.hbm_to_vmem [thread:$0]  %s2767_s6, 16, %s99_s3, [#allocation12]  }
  0xae   :  { %s2098_s23 = scalar_lea.hbm %s2769_s8, 16 }
  0xaf   :  { %p2099_p10 = scmp.ne.s32.totalorder %s2769_s8, %s2098_s23  ;;  %p2102_p11 = scmp.lt.u32.totalorder %s2098_s23, %s2769_s8 }
  0xb1   :  { %p2104_p12 = pnand %p2102_p11, %p2099_p10 }
  0xb3   :  { %2107 = shalt.err (!%p2104_p12)
}
  0xb4   :  { %s2108_s2 = scalar_lea.vmem %s119_s9, 16  ;;  %s2112_s24 = scalar_lea.vmem %s119_s9, 32 }
  0xb5   :  { %p2109_p13 = scmp.ne.s32.totalorder %s119_s9, %s2108_s2  ;;  %p2113_p0 = scmp.lt.s32.totalorder %s119_s9, %s119_s9 }
  0xb6   :  { %p2114_p1 = scmp.lt.s32.totalorder %s2112_s24, %s2108_s2 }
  0xb8   :  { %p2115_p2 = por %p2114_p1, %p2113_p0 }
  0xba   :  { %p2116_p3 = pnand %p2115_p2, %p2109_p13 }
  0xbc   :  { %2119 = shalt.err (!%p2116_p3)
}
  0xbd   :  { %121 = dma.hbm_to_vmem [thread:$0]  %s2769_s8, 16, %s119_s9, [#allocation15]  }
  0xbe   :  { %s2215_s3 = smov [#allocation19]   ;;  %s2216_s1 = smov [#allocation22]  }
  0xbf   :  { %s140_s22 = sshll.u32 %s2215_s3, 4  ;;  %s162_s30 = sshll.u32 %s2216_s1, 4  ;;  %s141_s22 = int_to_ptr.vmem [resolvable:$true] %s140_s22  ;;  %s163_s30 = int_to_ptr.vmem [resolvable:$true] %s162_s30 }
  0xc0   :  { %s2120_s25 = scalar_lea.hbm %s2771_s10, 16 }
  0xc1   :  { %p2121_p4 = scmp.ne.s32.totalorder %s2771_s10, %s2120_s25  ;;  %p2124_p5 = scmp.lt.u32.totalorder %s2120_s25, %s2771_s10 }
  0xc3   :  { %p2126_p6 = pnand %p2124_p5, %p2121_p4 }
  0xc5   :  { %2129 = shalt.err (!%p2126_p6)
}
  0xc6   :  { %s2130_s8 = scalar_lea.vmem %s141_s22, 16  ;;  %s2134_s9 = scalar_lea.vmem %s141_s22, 32 }
  0xc7   :  { %p2131_p7 = scmp.ne.s32.totalorder %s141_s22, %s2130_s8  ;;  %p2135_p8 = scmp.lt.s32.totalorder %s141_s22, %s141_s22 }
  0xc8   :  { %p2136_p9 = scmp.lt.s32.totalorder %s2134_s9, %s2130_s8 }
  0xca   :  { %p2137_p10 = por %p2136_p9, %p2135_p8 }
  0xcc   :  { %p2138_p11 = pnand %p2137_p10, %p2131_p7 }
  0xce   :  { %2141 = shalt.err (!%p2138_p11)
}
  0xcf   :  { %143 = dma.hbm_to_vmem [thread:$0]  %s2771_s10, 16, %s141_s22, [#allocation18]  }
  0xd0   :  { %s2142_s23 = scalar_lea.hbm %s2773_s12, 16 }
  0xd1   :  { %p2143_p12 = scmp.ne.s32.totalorder %s2773_s12, %s2142_s23  ;;  %p2146_p13 = scmp.lt.u32.totalorder %s2142_s23, %s2773_s12 }
  0xd3   :  { %p2148_p0 = pnand %p2146_p13, %p2143_p12 }
  0xd5   :  { %2151 = shalt.err (!%p2148_p0)
}
  0xd6   :  { %s2152_s2 = scalar_lea.vmem %s163_s30, 16  ;;  %s2156_s24 = scalar_lea.vmem %s163_s30, 32 }
  0xd7   :  { %p2153_p1 = scmp.ne.s32.totalorder %s163_s30, %s2152_s2  ;;  %p2157_p2 = scmp.lt.s32.totalorder %s163_s30, %s163_s30 }
  0xd8   :  { %p2158_p3 = scmp.lt.s32.totalorder %s2156_s24, %s2152_s2 }
  0xda   :  { %p2159_p4 = por %p2158_p3, %p2157_p2 }
  0xdc   :  { %p2160_p5 = pnand %p2159_p4, %p2153_p1 }
  0xde   :  { %2163 = shalt.err (!%p2160_p5)
}
  0xdf   :  { %165 = dma.hbm_to_vmem [thread:$0]  %s2773_s12, 16, %s163_s30, [#allocation21]  }
  0xe0   :  { %2186 = dma.done.wait [#allocation3], 256  }
  0xe1   :  { %2187 = vsyncadd [#allocation3], 4294967040 }
  0xe2   :  { %2188 = dma.done.wait [#allocation6], 32  }
  0xe3   :  { %2189 = vsyncadd [#allocation6], 4294967264 }
  0xe4   :  { %2190 = dma.done.wait [#allocation9], 528  }
  0xe5   :  { %2191 = vsyncadd [#allocation9], 4294966768 }
  0xe6   :  { %2192 = dma.done.wait [#allocation12], 528  }
  0xe7   :  { %2193 = vsyncadd [#allocation12], 4294966768 }
  0xe8   :  { %2194 = dma.done.wait [#allocation15], 32  }
  0xe9   :  { %2195 = vsyncadd [#allocation15], 4294967264 }
  0xea   :  { %2196 = dma.done.wait [#allocation18], 528  }
  0xeb   :  { %2197 = vsyncadd [#allocation18], 4294966768 }
  0xec   :  { %2198 = dma.done.wait [#allocation21], 2064  }
  0xed   :  { %2199 = vsyncadd [#allocation21], 4294965232  ;;  %vm210_vm0 = vcmask 261120   ;;  %v2468_v0 = vld [vmem:[#allocation2] sm:$0xff]  ;;  %v2470_v1 = vld [vmem:[#allocation2 + $0x8] sm:$0xff]  ;;  %v2217_v17 = vmov 0.0  }
  0xee   :  { %v211_v2 = vsel %vm210_vm0, %v2468_v0, 0.0  ;;  %v214_v3 = vsel %vm210_vm0, %v2470_v1, 0.0  ;;  %v269_v14 = vld [vmem:[#allocation8] sm:$0xff]  ;;  %v270_v15 = vld [vmem:[#allocation8 + $0x8] sm:$0xff]  ;;  %v271_v16 = vld [vmem:[#allocation8 + $0x10] sm:$0xff]  ;;  %1646 = vmatprep.subr.bf16.mxu0 %v2217_v17  ;;  %vm2218_vm1 = vmmov 0   ;;  %1666 = vmatprep.subr.bf16.mxu1 %v2217_v17 }
  0xef   :  { %212 = vadd.xlane.f32.xlu0 %v211_v2  ;;  %v273_v18 = vpack.c.bf16 %v270_v15, %v269_v14  ;;  %v272_v19 = vld [vmem:[#allocation8 + $0x18] sm:$0xff]  ;;  %1650 = vmatprep.mubr.msk.bf16.mxu0 %vm2218_vm1, %v2217_v17  ;;  %v1571_v48 = vld [vmem:[#allocation10] ss:$0 sm:$0xff]  ;;  %s2219_s12 = smov 112   ;;  %s2220_s29 = smov 120   ;;  %vm357_vm6 = vcmask 64512  }
  0xf0   :  { %1668 = vmatprep.mubr.msk.bf16.mxu1 %vm2218_vm1, %v2217_v17  ;;  %v274_v20 = vpack.c.bf16 %v272_v19, %v271_v16  ;;  %v1569_v39 = vld [vmem:[#allocation5] ss:$0 sm:$0xff]  ;;  %v1570_v43 = vld [vmem:[#allocation7] ss:$0 sm:$0xff]  ;;  %s2221_s3 = smov 104   ;;  %s2222_s22 = smov 96  }
  0xf1   :  { %1647 = vmatpush3.bf16.msra.mxu0 %v273_v18  ;;  %s2223_s1 = smov 64   ;;  %vm863_vm8 = vcmask 1043456   ;;  %s2224_s30 = smov 16   ;;  %vm1256_vm9 = vcmask 130048   ;;  %vm1258_vm10 = vcmask 195584  }
  0xf2   :  { %1648 = vmatprep.subr.bf16.mxu0 %v2217_v17  ;;  %s2225_s15 = smov 24   ;;  %s2226_s0 = smov [#allocation23]  }
  0xf3   :  { %215 = vadd.xlane.f32.xlu0 %v214_v3  ;;  %s1551_s25 = sshll.u32 %s2226_s0, 4  ;;  %s1552_s25 = int_to_ptr.vmem [resolvable:$true] %s1551_s25 }
  0xf4   :  { %s2164_s17 = scalar_lea.vmem %s1552_s25, 256  ;;  %p2169_p7 = scmp.lt.s32.totalorder %s1552_s25, %s1552_s25 }
  0xf5   :  { %1649 = vmatpush3.bf16.msra.mxu0 %v274_v20  ;;  %p2165_p6 = scmp.ne.s32.totalorder %s1552_s25, %s2164_s17  ;;  %p2170_p8 = scmp.lt.s32.totalorder %s2164_s17, %s2164_s17 }
  0xf6   :  { %1654 = vmatprep.subr.bf16.mxu0 %v2217_v17 }
  0xf7   :  { %p2171_p9 = por %p2170_p8, %p2169_p7 }
  0xf9   :  { %p2172_p10 = pnand %p2171_p9, %p2165_p6 }
 0x17c   :  { %v213_v4 = vpop.xlane.xlu0 %212 }
 0x17d   :  { %v218_v5 = vmul.f32 0.03125, %v213_v4 }
 0x17f   :  { %v220_v6 = vsub.f32 %v2468_v0, %v218_v5 }
 0x180   :  { %v216_v7 = vpop.xlane.xlu0 %215 }
 0x181   :  { %v219_v8 = vmul.f32 0.03125, %v216_v7  ;;  %v222_v9 = vmul.f32 %v220_v6, %v220_v6 }
 0x183   :  { %v221_v10 = vsub.f32 %v2470_v1, %v219_v8  ;;  %v224_v11 = vsel %vm210_vm0, %v222_v9, 0.0 }
 0x184   :  { %225 = vadd.xlane.f32.xlu1 %v224_v11 }
 0x185   :  { %v223_v12 = vmul.f32 %v221_v10, %v221_v10 }
 0x187   :  { %v227_v13 = vsel %vm210_vm0, %v223_v12, 0.0 }
 0x188   :  { %228 = vadd.xlane.f32.xlu1 %v227_v13 }
 0x211   :  { %v226_v21 = vpop.xlane.xlu1 %225 }
 0x212   :  { %v230_v22 = vmul.f32 0.03125, %v226_v21 }
 0x214   :  { %v232_v23 = vadd.f32 1e-05, %v230_v22 }
 0x215   :  { %v229_v24 = vpop.xlane.xlu1 %228 }
 0x216   :  { %1826 = vrsqrt.f32 %v232_v23  ;;  %v231_v25 = vmul.f32 0.03125, %v229_v24  ;;  %vm236_vm2 = vcmp.eq.f32.partialorder %v232_v23, inf  ;;  %v239_v29 = vand.u32 2147483648, %v232_v23 }
 0x217   :  { %vm238_vm3 = vcmp.eq.f32.partialorder %v232_v23, 0.0  ;;  %v747_v24 = vlaneseq }
 0x218   :  { %v233_v26 = vadd.f32 1e-05, %v231_v25 }
 0x219   :  { %v748_v25 = vshrl.u32 %v747_v24, 7 }
 0x21a   :  { %1828 = vrsqrt.f32 %v233_v26  ;;  %vm243_vm4 = vcmp.eq.f32.partialorder %v233_v26, inf  ;;  %v246_v34 = vand.u32 2147483648, %v233_v26  ;;  %vm245_vm5 = vcmp.eq.f32.partialorder %v233_v26, 0.0 }
 0x220   :  { %v1827_v27 = vpop.eup %1826 }
 0x221   :  { %v235_v28 = vmul.f32 %v1827_v27, %v232_v23 }
 0x223   :  { %v237_v30 = vsel %vm236_vm2, %v232_v23, %v235_v28 }
 0x224   :  { %v240_v31 = vsel %vm238_vm3, %v239_v29, %v237_v30  ;;  %v1829_v32 = vpop.eup %1828 }
 0x225   :  { %1830 = vrcp.f32 %v240_v31  ;;  %v242_v33 = vmul.f32 %v1829_v32, %v233_v26 }
 0x227   :  { %v244_v35 = vsel %vm243_vm4, %v233_v26, %v242_v33  ;;  %v750_v26 = vand.u32 127, %v747_v24 }
 0x228   :  { %v247_v36 = vsel %vm245_vm5, %v246_v34, %v244_v35 }
 0x229   :  { %1832 = vrcp.f32 %v247_v36  ;;  %vm2563_vm7 = vcmp.le.s32.totalorder %v750_v26, %v748_v25 }
 0x22f   :  { %v1831_v37 = vpop.eup %1830 }
 0x230   :  { %v249_v38 = vmul.f32 %v1831_v37, %v220_v6 }
 0x232   :  { %v258_v42 = vmul.f32 %v1569_v39, %v249_v38 }
 0x233   :  { %v1833_v40 = vpop.eup %1832 }
 0x234   :  { %v251_v41 = vmul.f32 %v1833_v40, %v221_v10  ;;  %v266_v45 = vadd.f32 %v1570_v43, %v258_v42 }
 0x236   :  { %v259_v44 = vmul.f32 %v1569_v39, %v251_v41 }
 0x238   :  { %v267_v46 = vadd.f32 %v1570_v43, %v259_v44 }
 0x23a   :  { %v268_v47 = vpack.c.bf16 %v267_v46, %v266_v45 }
 0x23c   :  { %1651 = vmatmul.mubr.msk.bf16.vlgmr.msra.gmra.mrb[0].mxu0 %vm210_vm0, %v268_v47 }
 0x23d   :  { %1656 = vmatprep.mubr.msk.bf16.mxu0 %vm2218_vm1, %v2217_v17 }
 0x30f   :  { %v319_v49 = vpop.f32.mrb[0].mxu0 }
 0x310   :  { %v320_v50 = vadd.f32 %v1571_v48, %v319_v49  ;;  %v1652_v51 = vpop.f32.mrb[1].mxu0 }
 0x311   :  { %v322_v52 = vpop.f32.mrb[2].mxu0 }
 0x312   :  { %330 = vrot.lane.b32.xlu1 %v320_v50, %s2219_s12  ;;  %327 = vrot.lane.b32.xlu0 %v320_v50, %s2220_s29  ;;  %v1653_v53 = vpop.f32.mrb[3].mxu0  ;;  %v323_v54 = vadd.f32 %v1571_v48, %v322_v52  ;;  %v2491_v55 = vpack.c.bf16 %v320_v50, %v320_v50 }
 0x314   :  { %v2502_v63 = vpack.c.bf16 %v323_v54, %v323_v54 }
 0x316   :  { %333 = vrot.lane.b32.xlu1 %v320_v50, %s2221_s3  ;;  %340 = vrot.lane.b32.xlu0 %v323_v54, %s2219_s12 }
 0x31a   :  { %355 = vrot.lane.b32.xlu0 %v2491_v55, %s2222_s22  ;;  %337 = vrot.lane.b32.xlu1 %v323_v54, %s2220_s29 }
 0x31e   :  { %343 = vrot.lane.b32.xlu1 %v323_v54, %s2221_s3 }
 0x384   :  { %v331_v56 = vpop.permute.xlu1 %330  ;;  %v328_v57 = vpop.permute.xlu0 %327 }
 0x385   :  { %v2494_v58 = vpack.c.bf16 %v331_v56, %v331_v56  ;;  %v2496_v59 = vpack.c.bf16 %v328_v57, %v328_v57 }
 0x387   :  { %454 = vrot.lane.b32.xlu0 %v2494_v58, %s2222_s22  ;;  %405 = vrot.lane.b32.xlu1 %v2496_v59, %s2222_s22 }
 0x388   :  { %v334_v60 = vpop.permute.xlu1 %333  ;;  %v341_v61 = vpop.permute.xlu0 %340 }
 0x389   :  { %v2500_v62 = vpack.c.bf16 %v334_v60, %v334_v60  ;;  %v2506_v4 = vpack.c.bf16 %v341_v61, %v341_v61 }
 0x38b   :  { %503 = vrot.lane.b32.xlu1 %v2500_v62, %s2222_s22  ;;  %552 = vrot.lane.b32.xlu0 %v2502_v63, %s2222_s22 }
 0x38c   :  { %v356_v2 = vpop.permute.xlu0 %355  ;;  %v338_v3 = vpop.permute.xlu1 %337 }
 0x38d   :  { %v362_v5 = vsel %vm357_vm6, %v356_v2, 0  ;;  %v2509_v6 = vpack.c.bf16 %v338_v3, %v338_v3 }
 0x38e   :  { %1655 = vmatpush3.bf16.xpose.msra.mxu0 %v362_v5 }
 0x38f   :  { %601 = vrot.lane.b32.xlu1 %v2509_v6, %s2222_s22  ;;  %650 = vrot.lane.b32.xlu0 %v2506_v4, %s2222_s22 }
 0x390   :  { %v344_v7 = vpop.permute.xlu1 %343  ;;  %1660 = vmatprep.subr.bf16.mxu0 %v2217_v17 }
 0x391   :  { %v2514_v8 = vpack.c.bf16 %v344_v7, %v344_v7 }
 0x393   :  { %699 = vrot.lane.b32.xlu1 %v2514_v8, %s2222_s22 }
 0x395   :  { %1657 = vmatmul.mubr.msk.bf16.vlgmr.msra.gmra.mrb[4].mxu0 %vm357_vm6, %v2491_v55 }
 0x396   :  { %1662 = vmatprep.mubr.msk.bf16.mxu0 %vm2218_vm1, %v2217_v17 }
 0x3f9   :  { %v455_v9 = vpop.permute.xlu0 %454  ;;  %v406_v10 = vpop.permute.xlu1 %405 }
 0x3fa   :  { %v411_v11 = vsel %vm357_vm6, %v406_v10, 0  ;;  %v460_v12 = vsel %vm357_vm6, %v455_v9, 0 }
 0x3fb   :  { %1661 = vmatpush3.bf16.xpose.msra.mxu0 %v411_v11  ;;  %1667 = vmatpush3.bf16.xpose.msra.mxu1 %v460_v12 }
 0x3fc   :  { %1672 = vmatprep.subr.bf16.mxu0 %v2217_v17  ;;  %1678 = vmatprep.subr.bf16.mxu1 %v2217_v17 }
 0x3fd   :  { %v504_v13 = vpop.permute.xlu1 %503  ;;  %v553_v14 = vpop.permute.xlu0 %552 }
 0x3fe   :  { %v509_v15 = vsel %vm357_vm6, %v504_v13, 0  ;;  %v558_v16 = vsel %vm357_vm6, %v553_v14, 0 }
 0x401   :  { %v602_v18 = vpop.permute.xlu1 %601  ;;  %v651_v19 = vpop.permute.xlu0 %650 }
 0x402   :  { %1663 = vmatmul.mubr.msk.bf16.vlgmr.msra.gmra.mrb[8].mxu0 %vm357_vm6, %v2496_v59  ;;  %1669 = vmatmul.mubr.msk.bf16.vlgmr.msra.gmra.mrb[0].mxu1 %vm357_vm6, %v2494_v58  ;;  %v607_v20 = vsel %vm357_vm6, %v602_v18, 0  ;;  %v656_v21 = vsel %vm357_vm6, %v651_v19, 0 }
 0x403   :  { %1673 = vmatpush3.bf16.xpose.msra.mxu0 %v509_v15  ;;  %1679 = vmatpush3.bf16.xpose.msra.mxu1 %v558_v16 }
 0x404   :  { %1674 = vmatprep.mubr.msk.bf16.mxu0 %vm2218_vm1, %v2217_v17  ;;  %1680 = vmatprep.mubr.msk.bf16.mxu1 %vm2218_vm1, %v2217_v17 }
 0x405   :  { %1684 = vmatprep.subr.bf16.mxu0 %v2217_v17  ;;  %1690 = vmatprep.subr.bf16.mxu1 %v2217_v17  ;;  %v700_v22 = vpop.permute.xlu1 %699 }
 0x406   :  { %v705_v23 = vsel %vm357_vm6, %v700_v22, 0 }
 0x40a   :  { %1675 = vmatmul.mubr.msk.bf16.vlgmr.msra.gmra.mrb[12].mxu0 %vm357_vm6, %v2500_v62  ;;  %1681 = vmatmul.mubr.msk.bf16.vlgmr.msra.gmra.mrb[4].mxu1 %vm357_vm6, %v2502_v63 }
 0x40b   :  { %1685 = vmatpush3.bf16.xpose.msra.mxu0 %v607_v20  ;;  %1691 = vmatpush3.bf16.xpose.msra.mxu1 %v656_v21 }
 0x40c   :  { %1686 = vmatprep.mubr.msk.bf16.mxu0 %vm2218_vm1, %v2217_v17  ;;  %1692 = vmatprep.mubr.msk.bf16.mxu1 %vm2218_vm1, %v2217_v17 }
 0x40d   :  { %1696 = vmatprep.subr.bf16.mxu0 %v2217_v17  ;;  %1702 = vmatprep.subr.bf16.mxu1 %v2217_v17 }
 0x412   :  { %1687 = vmatmul.mubr.msk.bf16.vlgmr.msra.gmra.mrb[16].mxu0 %vm357_vm6, %v2509_v6  ;;  %1693 = vmatmul.mubr.msk.bf16.vlgmr.msra.gmra.mrb[8].mxu1 %vm357_vm6, %v2506_v4 }
 0x413   :  { %1697 = vmatpush3.bf16.xpose.msra.mxu0 %v705_v23  ;;  %1698 = vmatprep.mubr.msk.bf16.mxu0 %vm2218_vm1, %v2217_v17 }
 0x414   :  { %1708 = vmatprep.subr.bf16.mxu0 %v2217_v17  ;;  %1704 = vmatprep.mubr.msk.bf16.mxu1 %vm2218_vm1, %v2217_v17 }
 0x41a   :  { %1699 = vmatmul.mubr.msk.bf16.vlgmr.msra.gmra.mrb[20].mxu0 %vm357_vm6, %v2514_v8 }
 0x41b   :  { %1710 = vmatprep.mubr.msk.bf16.mxu0 %vm2218_vm1, %v2217_v17 }
 0x468   :  { %v398_v28 = vpop.f32.mrb[4].mxu0 }
 0x469   :  { %v754_v29 = vsel %vm2563_vm7, %v398_v28, -1e+30  ;;  %v1658_v30 = vpop.f32.mrb[5].mxu0 }
 0x46a   :  { %v401_v31 = vpop.f32.mrb[6].mxu0  ;;  %v762_v32 = vsel %vm357_vm6, %v754_v29, -inf }
 0x46b   :  { %763 = vmax.xlane.f32.xlu0 %v762_v32  ;;  %v1659_v33 = vpop.f32.mrb[7].mxu0 }
 0x4d5   :  { %v447_v34 = vpop.f32.mrb[8].mxu0  ;;  %v496_v35 = vpop.f32.mrb[0].mxu1 }
 0x4d6   :  { %v2572_v36 = vsel %vm2563_vm7, %v447_v34, -1e+30  ;;  %v756_v37 = vsel %vm2563_vm7, %v496_v35, -1e+30  ;;  %v1664_v38 = vpop.f32.mrb[9].mxu0  ;;  %v1670_v39 = vpop.f32.mrb[1].mxu1 }
 0x4d7   :  { %v450_v40 = vpop.f32.mrb[10].mxu0  ;;  %v499_v41 = vpop.f32.mrb[2].mxu1  ;;  %v768_v42 = vsel %vm357_vm6, %v756_v37, -inf  ;;  %v765_v43 = vsel %vm357_vm6, %v2572_v36, -inf }
 0x4d8   :  { %v1671_v44 = vpop.f32.mrb[3].mxu1  ;;  %769 = vmax.xlane.f32.xlu0 %v768_v42  ;;  %766 = vmax.xlane.f32.xlu1 %v765_v43  ;;  %v1665_v45 = vpop.f32.mrb[11].mxu0 }
 0x4dd   :  { %v545_v46 = vpop.f32.mrb[12].mxu0  ;;  %v594_v47 = vpop.f32.mrb[4].mxu1 }
 0x4de   :  { %v2581_v48 = vsel %vm2563_vm7, %v545_v46, -1e+30  ;;  %v1676_v49 = vpop.f32.mrb[13].mxu0  ;;  %v1682_v50 = vpop.f32.mrb[5].mxu1  ;;  %v2587_v54 = vsel %vm2563_vm7, %v594_v47, -1e+30 }
 0x4df   :  { %v548_v51 = vpop.f32.mrb[14].mxu0  ;;  %v597_v52 = vpop.f32.mrb[6].mxu1  ;;  %v771_v53 = vsel %vm357_vm6, %v2581_v48, -inf  ;;  %v774_v60 = vsel %vm357_vm6, %v2587_v54, -inf }
 0x4e0   :  { %v1683_v56 = vpop.f32.mrb[7].mxu1  ;;  %772 = vmax.xlane.f32.xlu0 %v771_v53  ;;  %v1677_v57 = vpop.f32.mrb[15].mxu0 }
 0x4e4   :  { %775 = vmax.xlane.f32.xlu0 %v774_v60 }
 0x4e5   :  { %v643_v61 = vpop.f32.mrb[16].mxu0  ;;  %v692_v2 = vpop.f32.mrb[8].mxu1 }
 0x4e6   :  { %v2593_v3 = vsel %vm2563_vm7, %v643_v61, -1e+30  ;;  %v2597_v5 = vsel %vm2563_vm7, %v692_v2, -1e+30  ;;  %v1688_v7 = vpop.f32.mrb[17].mxu0  ;;  %v1694_v9 = vpop.f32.mrb[9].mxu1 }
 0x4e7   :  { %v646_v10 = vpop.f32.mrb[18].mxu0  ;;  %v695_v11 = vpop.f32.mrb[10].mxu1  ;;  %v780_v12 = vsel %vm357_vm6, %v2597_v5, -inf  ;;  %v777_v13 = vsel %vm357_vm6, %v2593_v3, -inf }
 0x4e8   :  { %v1695_v14 = vpop.f32.mrb[11].mxu1  ;;  %781 = vmax.xlane.f32.xlu0 %v780_v12  ;;  %778 = vmax.xlane.f32.xlu1 %v777_v13  ;;  %v1689_v15 = vpop.f32.mrb[19].mxu0 }
 0x4ed   :  { %v741_v16 = vpop.f32.mrb[20].mxu0 }
 0x4ee   :  { %v1700_v18 = vpop.f32.mrb[21].mxu0  ;;  %v2615_v26 = vsel %vm2563_vm7, %v741_v16, -1e+30 }
 0x4ef   :  { %v744_v19 = vpop.f32.mrb[22].mxu0 }
 0x4f0   :  { %v1701_v20 = vpop.f32.mrb[23].mxu0 }
 0x4f8   :  { %v764_v21 = vpop.xlane.xlu0 %763 }
 0x4f9   :  { %907 = vrot.lane.b32.xlu1 %v2496_v59, %s2223_s1  ;;  %v786_v22 = vsub.f32 %v754_v29, %v764_v21 }
 0x4fb   :  { %v794_v23 = vmul.f32 1.442695, %v786_v22 }
 0x4fd   :  { %955 = vrot.lane.b32.xlu1 %v2494_v58, %s2223_s1  ;;  %1834 = vpow2.f32 %v794_v23  ;;  %v783_v58 = vsel %vm357_vm6, %v2615_v26, -inf }
 0x4fe   :  { %858 = vrot.lane.b32.xlu0 %v2491_v55, %s2223_s1 }
 0x507   :  { %v2609_v24 = vpop.eup %1834 }
 0x508   :  { %v810_v25 = vsel %vm357_vm6, %v2609_v24, 0.0 }
 0x51d   :  { %811 = vadd.xlane.f32.xlu0 %v810_v25 }
 0x521   :  { %784 = vmax.xlane.f32.xlu1 %v783_v58 }
 0x532   :  { %1003 = vrot.lane.b32.xlu1 %v2500_v62, %s2223_s1 }
 0x565   :  { %v770_v55 = vpop.xlane.xlu0 %769  ;;  %v767_v59 = vpop.xlane.xlu1 %766 }
 0x566   :  { %v788_v28 = vsub.f32 %v756_v37, %v770_v55  ;;  %v787_v29 = vsub.f32 %v2572_v36, %v767_v59 }
 0x568   :  { %v798_v30 = vmul.f32 1.442695, %v788_v28  ;;  %v796_v31 = vmul.f32 1.442695, %v787_v29 }
 0x56a   :  { %1836 = vpow2.f32 %v798_v30 }
 0x56b   :  { %1838 = vpow2.f32 %v796_v31 }
 0x56d   :  { %v773_v27 = vpop.xlane.xlu0 %772 }
 0x56e   :  { %v789_v43 = vsub.f32 %v2581_v48, %v773_v27 }
 0x570   :  { %v800_v46 = vmul.f32 1.442695, %v789_v43 }
 0x571   :  { %v776_v32 = vpop.xlane.xlu0 %775 }
 0x572   :  { %v790_v42 = vsub.f32 %v2587_v54, %v776_v32 }
 0x574   :  { %v2622_v33 = vpop.eup %1836  ;;  %v802_v44 = vmul.f32 1.442695, %v790_v42 }
 0x575   :  { %v2624_v34 = vpop.eup %1838  ;;  %v782_v35 = vpop.xlane.xlu0 %781  ;;  %v816_v62 = vsel %vm357_vm6, %v2622_v33, 0.0 }
 0x576   :  { %v779_v38 = vpop.xlane.xlu1 %778  ;;  %817 = vadd.xlane.f32.xlu0 %v816_v62  ;;  %v813_v37 = vsel %vm357_vm6, %v2624_v34, 0.0  ;;  %v792_v45 = vsub.f32 %v2597_v5, %v782_v35  ;;  %1840 = vpow2.f32 %v802_v44 }
 0x577   :  { %814 = vadd.xlane.f32.xlu1 %v813_v37  ;;  %v791_v47 = vsub.f32 %v2593_v3, %v779_v38  ;;  %1842 = vpow2.f32 %v800_v46 }
 0x578   :  { %v806_v49 = vmul.f32 1.442695, %v792_v45 }
 0x579   :  { %v859_v36 = vpop.permute.xlu0 %858  ;;  %v804_v50 = vmul.f32 1.442695, %v791_v47 }
 0x57a   :  { %v908_v39 = vpop.permute.xlu1 %907  ;;  %v865_v40 = vsel %vm863_vm8, %v859_v36, 0  ;;  %1844 = vpow2.f32 %v806_v49 }
 0x57b   :  { %v913_v41 = vsel %vm863_vm8, %v908_v39, 0  ;;  %1703 = vmatpush3.bf16.msra.mxu1 %v865_v40  ;;  %1846 = vpow2.f32 %v804_v50 }
 0x57c   :  { %1709 = vmatpush3.bf16.msra.mxu0 %v913_v41  ;;  %1714 = vmatprep.subr.bf16.mxu1 %v2217_v17 }
 0x57d   :  { %1720 = vmatprep.subr.bf16.mxu0 %v2217_v17 }
 0x588   :  { %1099 = vrot.lane.b32.xlu1 %v2509_v6, %s2223_s1  ;;  %v2642_v6 = vpop.eup %1840 }
 0x589   :  { %v2644_v51 = vpop.eup %1842  ;;  %v822_v48 = vsel %vm357_vm6, %v2642_v6, 0.0 }
 0x58a   :  { %v2648_v53 = vpop.eup %1844  ;;  %v819_v54 = vsel %vm357_vm6, %v2644_v51, 0.0 }
 0x58b   :  { %v2652_v56 = vpop.eup %1846  ;;  %v828_v60 = vsel %vm357_vm6, %v2648_v53, 0.0 }
 0x58c   :  { %1051 = vrot.lane.b32.xlu0 %v2502_v63, %s2223_s1  ;;  %v956_v63 = vpop.permute.xlu1 %955  ;;  %v825_v2 = vsel %vm357_vm6, %v2652_v56, 0.0 }
 0x58d   :  { %v961_v10 = vsel %vm863_vm8, %v956_v63, 0 }
 0x5aa   :  { %v812_v52 = vpop.xlane.xlu0 %811 }
 0x5ab   :  { %1848 = vrcp.f32 %v812_v52  ;;  %823 = vadd.xlane.f32.xlu0 %v822_v48 }
 0x5ac   :  { %820 = vadd.xlane.f32.xlu1 %v819_v54 }
 0x5ae   :  { %v785_v57 = vpop.xlane.xlu1 %784 }
 0x5af   :  { %v793_v61 = vsub.f32 %v2615_v26, %v785_v57  ;;  %829 = vadd.xlane.f32.xlu0 %v828_v60 }
 0x5b0   :  { %826 = vadd.xlane.f32.xlu1 %v825_v2  ;;  %v1276_v2 = vld [vmem:[#allocation11] sm:$0xff] }
 0x5b1   :  { %v808_v3 = vmul.f32 1.442695, %v793_v61 }
 0x5b2   :  { %v1004_v13 = vpop.permute.xlu1 %1003 }
 0x5b3   :  { %1850 = vpow2.f32 %v808_v3  ;;  %v1277_v3 = vld [vmem:[#allocation11 + $0x8] sm:$0xff] }
 0x5b5   :  { %v1849_v5 = vpop.eup %1848 }
 0x5b6   :  { %v842_v7 = vmul.f32 %v1849_v5, %v2609_v24 }
 0x5b8   :  { %v850_v9 = vpack.c.bf16 %v842_v7, %v842_v7 }
 0x5ba   :  { %1705 = vmatmul.mubr.msk.bf16.vlgmr.msra.gmra.mrb[12].mxu1 %vm357_vm6, %v850_v9  ;;  %v1280_v9 = vpack.c.bf16 %v1277_v3, %v1276_v2  ;;  %v1394_v2 = vld [vmem:[#allocation17] sm:$0xff]  ;;  %v1395_v3 = vld [vmem:[#allocation17 + $0x8] sm:$0xff] }
 0x5bb   :  { %1715 = vmatpush3.bf16.msra.mxu1 %v961_v10  ;;  %1716 = vmatprep.mubr.msk.bf16.mxu1 %vm2218_vm1, %v2217_v17 }
 0x5bc   :  { %1726 = vmatprep.subr.bf16.mxu1 %v2217_v17 }
 0x5bd   :  { %v2665_v11 = vpop.eup %1850 }
 0x5be   :  { %v831_v12 = vsel %vm357_vm6, %v2665_v11, 0.0 }
 0x5bf   :  { %832 = vadd.xlane.f32.xlu1 %v831_v12 }
 0x5c5   :  { %1147 = vrot.lane.b32.xlu0 %v2506_v4, %s2223_s1  ;;  %v1009_v4 = vsel %vm863_vm8, %v1004_v13, 0 }
 0x5d0   :  { %1195 = vrot.lane.b32.xlu1 %v2514_v8, %s2223_s1 }
 0x603   :  { %v818_v14 = vpop.xlane.xlu0 %817 }
 0x604   :  { %1852 = vrcp.f32 %v818_v14  ;;  %v815_v15 = vpop.xlane.xlu1 %814 }
 0x605   :  { %1854 = vrcp.f32 %v815_v15 }
 0x607   :  { %v1052_v21 = vpop.permute.xlu0 %1051 }
 0x608   :  { %v1057_v24 = vsel %vm863_vm8, %v1052_v21, 0  ;;  %v1100_v8 = vpop.permute.xlu1 %1099 }
 0x609   :  { %v1105_v38 = vsel %vm863_vm8, %v1100_v8, 0 }
 0x60e   :  { %v1853_v16 = vpop.eup %1852 }
 0x60f   :  { %v1855_v18 = vpop.eup %1854  ;;  %v844_v19 = vmul.f32 %v1853_v16, %v2622_v33 }
 0x610   :  { %v843_v20 = vmul.f32 %v1855_v18, %v2624_v34 }
 0x611   :  { %v852_v22 = vpack.c.bf16 %v844_v19, %v844_v19 }
 0x612   :  { %v851_v23 = vpack.c.bf16 %v843_v20, %v843_v20 }
 0x613   :  { %1717 = vmatmul.mubr.msk.bf16.vlgmr.msra.gmra.mrb[16].mxu1 %vm357_vm6, %v852_v22 }
 0x614   :  { %1711 = vmatmul.mubr.msk.bf16.vlgmr.msra.gmra.mrb[24].mxu0 %vm357_vm6, %v851_v23  ;;  %1727 = vmatpush3.bf16.msra.mxu1 %v1057_v24  ;;  %v1278_v23 = vld [vmem:[#allocation11 + $0x10] sm:$0xff]  ;;  %v1279_v24 = vld [vmem:[#allocation11 + $0x18] sm:$0xff] }
 0x615   :  { %1721 = vmatpush3.bf16.msra.mxu0 %v1009_v4  ;;  %1722 = vmatprep.mubr.msk.bf16.mxu0 %vm2218_vm1, %v2217_v17  ;;  %v1281_v8 = vpack.c.bf16 %v1279_v24, %v1278_v23 }
 0x616   :  { %1728 = vmatprep.mubr.msk.bf16.mxu1 %vm2218_vm1, %v2217_v17  ;;  %1732 = vmatprep.subr.bf16.mxu0 %v2217_v17 }
 0x617   :  { %1738 = vmatprep.subr.bf16.mxu1 %v2217_v17 }
 0x638   :  { %v824_v25 = vpop.xlane.xlu0 %823 }
 0x639   :  { %1856 = vrcp.f32 %v824_v25  ;;  %v821_v26 = vpop.xlane.xlu1 %820 }
 0x63a   :  { %1858 = vrcp.f32 %v821_v26 }
 0x63c   :  { %v830_v58 = vpop.xlane.xlu0 %829 }
 0x63d   :  { %1860 = vrcp.f32 %v830_v58  ;;  %v827_v55 = vpop.xlane.xlu1 %826 }
 0x63e   :  { %1862 = vrcp.f32 %v827_v55 }
 0x640   :  { %v1148_v31 = vpop.permute.xlu0 %1147 }
 0x641   :  { %v1153_v35 = vsel %vm863_vm8, %v1148_v31, 0 }
 0x643   :  { %v1857_v59 = vpop.eup %1856 }
 0x644   :  { %v1859_v28 = vpop.eup %1858  ;;  %v846_v29 = vmul.f32 %v1857_v59, %v2642_v6 }
 0x645   :  { %v845_v30 = vmul.f32 %v1859_v28, %v2644_v51 }
 0x646   :  { %v854_v27 = vpack.c.bf16 %v846_v29, %v846_v29 }
 0x647   :  { %v1861_v32 = vpop.eup %1860  ;;  %v853_v33 = vpack.c.bf16 %v845_v30, %v845_v30 }
 0x648   :  { %v1863_v34 = vpop.eup %1862  ;;  %1729 = vmatmul.mubr.msk.bf16.vlgmr.msra.gmra.mrb[20].mxu1 %vm357_vm6, %v854_v27  ;;  %v848_v62 = vmul.f32 %v1861_v32, %v2648_v53 }
 0x649   :  { %1723 = vmatmul.mubr.msk.bf16.vlgmr.msra.gmra.mrb[28].mxu0 %vm357_vm6, %v853_v33  ;;  %1739 = vmatpush3.bf16.msra.mxu1 %v1153_v35  ;;  %v847_v37 = vmul.f32 %v1863_v34, %v2652_v56 }
 0x64a   :  { %1733 = vmatpush3.bf16.msra.mxu0 %v1105_v38  ;;  %1734 = vmatprep.mubr.msk.bf16.mxu0 %vm2218_vm1, %v2217_v17  ;;  %v856_v39 = vpack.c.bf16 %v848_v62, %v848_v62 }
 0x64b   :  { %1740 = vmatprep.mubr.msk.bf16.mxu1 %vm2218_vm1, %v2217_v17  ;;  %1744 = vmatprep.subr.bf16.mxu0 %v2217_v17  ;;  %v855_v40 = vpack.c.bf16 %v847_v37, %v847_v37 }
 0x64c   :  { %v833_v36 = vpop.xlane.xlu1 %832  ;;  %1750 = vmatprep.subr.bf16.mxu1 %v2217_v17 }
 0x64d   :  { %1864 = vrcp.f32 %v833_v36 }
 0x650   :  { %1741 = vmatmul.mubr.msk.bf16.vlgmr.msra.gmra.mrb[24].mxu1 %vm357_vm6, %v856_v39  ;;  %v1196_v41 = vpop.permute.xlu1 %1195 }
 0x651   :  { %1735 = vmatmul.mubr.msk.bf16.vlgmr.msra.gmra.mrb[32].mxu0 %vm357_vm6, %v855_v40  ;;  %v1201_v42 = vsel %vm863_vm8, %v1196_v41, 0  ;;  %1754 = vmatprep.mubr.msk.bf16.mxu1 %vm2218_vm1, %v2217_v17 }
 0x652   :  { %1745 = vmatpush3.bf16.msra.mxu0 %v1201_v42  ;;  %1746 = vmatprep.mubr.msk.bf16.mxu0 %vm2218_vm1, %v2217_v17  ;;  %v1589_v42 = vld [vmem:[#allocation13] ss:$0 sm:$0xff] }
 0x653   :  { %1758 = vmatprep.subr.bf16.mxu0 %v2217_v17  ;;  %1751 = vmatpush3.bf16.msra.mxu1 %v1280_v9  ;;  %v1397_v9 = vld [vmem:[#allocation17 + $0x18] sm:$0xff] }
 0x654   :  { %1752 = vmatprep.subr.bf16.mxu1 %v2217_v17 }
 0x657   :  { %v1865_v43 = vpop.eup %1864  ;;  %1753 = vmatpush3.bf16.msra.mxu1 %v1281_v8 }
 0x658   :  { %v849_v44 = vmul.f32 %v1865_v43, %v2665_v11  ;;  %1766 = vmatprep.subr.bf16.mxu1 %v2217_v17 }
 0x65a   :  { %v857_v45 = vpack.c.bf16 %v849_v44, %v849_v44 }
 0x65c   :  { %1747 = vmatmul.mubr.msk.bf16.vlgmr.msra.gmra.mrb[36].mxu0 %vm357_vm6, %v857_v45 }
 0x65d   :  { %1762 = vmatprep.mubr.msk.bf16.mxu0 %vm2218_vm1, %v2217_v17 }
 0x68d   :  { %v901_v46 = vpop.f32.mrb[12].mxu1 }
 0x68e   :  { %v1706_v47 = vpop.f32.mrb[13].mxu1 }
 0x68f   :  { %v904_v49 = vpop.f32.mrb[14].mxu1 }
 0x690   :  { %v1707_v50 = vpop.f32.mrb[15].mxu1 }
 0x6e6   :  { %v997_v6 = vpop.f32.mrb[16].mxu1 }
 0x6e7   :  { %v949_v51 = vpop.f32.mrb[24].mxu0  ;;  %v1718_v63 = vpop.f32.mrb[17].mxu1 }
 0x6e8   :  { %v1712_v52 = vpop.f32.mrb[25].mxu0  ;;  %v1000_v48 = vpop.f32.mrb[18].mxu1 }
 0x6e9   :  { %v952_v53 = vpop.f32.mrb[26].mxu0  ;;  %v1719_v54 = vpop.f32.mrb[19].mxu1 }
 0x6ea   :  { %v1713_v56 = vpop.f32.mrb[27].mxu0 }
 0x71b   :  { %v1093_v57 = vpop.f32.mrb[20].mxu1 }
 0x71c   :  { %v1045_v60 = vpop.f32.mrb[28].mxu0  ;;  %v1730_v61 = vpop.f32.mrb[21].mxu1 }
 0x71d   :  { %v1724_v5 = vpop.f32.mrb[29].mxu0  ;;  %v1096_v7 = vpop.f32.mrb[22].mxu1 }
 0x71e   :  { %v1048_v10 = vpop.f32.mrb[30].mxu0  ;;  %v1731_v11 = vpop.f32.mrb[23].mxu1  ;;  %v1396_v5 = vld [vmem:[#allocation17 + $0x10] sm:$0xff]  ;;  %v1398_v7 = vpack.c.bf16 %v1395_v3, %v1394_v2 }
 0x71f   :  { %v1725_v12 = vpop.f32.mrb[31].mxu0  ;;  %v1399_v10 = vpack.c.bf16 %v1397_v9, %v1396_v5 }
 0x720   :  { %1759 = vmatpush3.bf16.msra.mxu0 %v1398_v7 }
 0x721   :  { %1760 = vmatprep.subr.bf16.mxu0 %v2217_v17 }
 0x723   :  { %v1189_v13 = vpop.f32.mrb[24].mxu1 }
 0x724   :  { %v1141_v14 = vpop.f32.mrb[32].mxu0  ;;  %v1816_v15 = vpack.i.bf16 %v1189_v13, %v997_v6  ;;  %v1742_v16 = vpop.f32.mrb[25].mxu1  ;;  %1761 = vmatpush3.bf16.msra.mxu0 %v1399_v10 }
 0x725   :  { %v1811_v18 = vpack.i.bf16 %v1141_v14, %v949_v51  ;;  %v1736_v19 = vpop.f32.mrb[33].mxu0  ;;  %v1192_v20 = vpop.f32.mrb[26].mxu1 }
 0x726   :  { %v1144_v21 = vpop.f32.mrb[34].mxu0  ;;  %v1743_v22 = vpop.f32.mrb[27].mxu1  ;;  %1817 = vrot.lane.b32.xlu1 %v1816_v15, %s2224_s30 }
 0x727   :  { %1812 = vrot.lane.b32.xlu0 %v1811_v18, %s2206_s16  ;;  %v1737_v4 = vpop.f32.mrb[35].mxu0 }
 0x72f   :  { %v1237_v25 = vpop.f32.mrb[36].mxu0 }
 0x730   :  { %v1821_v26 = vpack.i.bf16 %v1237_v25, %v1045_v60  ;;  %v1748_v58 = vpop.f32.mrb[37].mxu0 }
 0x731   :  { %v1240_v55 = vpop.f32.mrb[38].mxu0 }
 0x732   :  { %1822 = vrot.lane.b32.xlu0 %v1821_v26, %s2225_s15  ;;  %v1749_v59 = vpop.f32.mrb[39].mxu0  ;;  %v1591_v55 = vld [vmem:[#allocation14] ss:$0 sm:$0xff] }
 0x798   :  { %v1818_v29 = vpop.permute.xlu1 %1817 }
 0x799   :  { %v1813_v28 = vpop.permute.xlu0 %1812  ;;  %v1820_v27 = vunpack.i.h.bf16 %v1818_v29  ;;  %v1819_v32 = vunpack.i.l.bf16 %v1818_v29 }
 0x79a   :  { %v1815_v30 = vunpack.i.h.bf16 %v1813_v28  ;;  %v1814_v31 = vunpack.i.l.bf16 %v1813_v28 }
 0x79c   :  { %v1272_v33 = vsel %vm357_vm6, %v1093_v57, %v1815_v30  ;;  %v1255_v34 = vsel %vm357_vm6, %v901_v46, %v1814_v31  ;;  %v1592_v30 = vld [vmem:[#allocation16] ss:$0 sm:$0xff] }
 0x79d   :  { %v1257_v37 = vsel %vm1256_vm9, %v1255_v34, %v1819_v32  ;;  %v1273_v36 = vsel %vm1256_vm9, %v1272_v33, %v1820_v27  ;;  %v1470_v34 = vld [vmem:[#allocation20] sm:$0xff] }
 0x7a4   :  { %v1823_v35 = vpop.permute.xlu0 %1822 }
 0x7a5   :  { %v1825_v38 = vunpack.i.h.bf16 %v1823_v35  ;;  %v1824_v62 = vunpack.i.l.bf16 %v1823_v35  ;;  %v1471_v35 = vld [vmem:[#allocation20 + $0x8] sm:$0xff] }
 0x7a7   :  { %v1274_v39 = vsel %vm1258_vm10, %v1273_v36, %v1825_v38  ;;  %v1259_v40 = vsel %vm1258_vm10, %v1257_v37, %v1824_v62  ;;  %v1486_v38 = vpack.c.bf16 %v1471_v35, %v1470_v34  ;;  %v1472_v62 = vld [vmem:[#allocation20 + $0x10] sm:$0xff]  ;;  %v1473_v37 = vld [vmem:[#allocation20 + $0x18] sm:$0xff] }
 0x7a8   :  { %v1275_v41 = vpack.c.bf16 %v1274_v39, %v1259_v40  ;;  %v1487_v36 = vpack.c.bf16 %v1473_v37, %v1472_v62  ;;  %v1474_v39 = vld [vmem:[#allocation20 + $0x20] sm:$0xff]  ;;  %v1475_v40 = vld [vmem:[#allocation20 + $0x28] sm:$0xff] }
 0x7aa   :  { %1755 = vmatmul.mubr.msk.bf16.vlgmr.msra.gmra.mrb[28].mxu1 %vm210_vm0, %v1275_v41  ;;  %v1488_v41 = vpack.c.bf16 %v1475_v40, %v1474_v39 }
 0x7ab   :  { %1782 = vmatprep.mubr.msk.bf16.mxu1 %vm2218_vm1, %v2217_v17  ;;  %1767 = vmatpush3.bf16.msra.mxu1 %v1486_v38 }
 0x7ac   :  { %1768 = vmatprep.subr.bf16.mxu1 %v2217_v17 }
 0x7af   :  { %1769 = vmatpush3.bf16.msra.mxu1 %v1487_v36 }
 0x7b0   :  { %1770 = vmatprep.subr.bf16.mxu1 %v2217_v17 }
 0x7b3   :  { %1771 = vmatpush3.bf16.msra.mxu1 %v1488_v41 }
 0x7b4   :  { %1772 = vmatprep.subr.bf16.mxu1 %v2217_v17 }
 0x87d   :  { %v1326_v43 = vpop.f32.mrb[28].mxu1 }
 0x87e   :  { %v1327_v44 = vadd.f32 %v1589_v42, %v1326_v43  ;;  %v1756_v45 = vpop.f32.mrb[29].mxu1  ;;  %v1477_v43 = vld [vmem:[#allocation20 + $0x38] sm:$0xff] }
 0x87f   :  { %v1329_v46 = vpop.f32.mrb[30].mxu1  ;;  %v1478_v45 = vld [vmem:[#allocation20 + $0x40] sm:$0xff] }
 0x880   :  { %v2720_v47 = vadd.f32 %v1327_v44, %v2468_v0  ;;  %v1330_v49 = vadd.f32 %v1589_v42, %v1329_v46  ;;  %v1757_v50 = vpop.f32.mrb[31].mxu1  ;;  %v1476_v42 = vld [vmem:[#allocation20 + $0x30] sm:$0xff]  ;;  %v1479_v46 = vld [vmem:[#allocation20 + $0x48] sm:$0xff] }
 0x881   :  { %v1489_v44 = vpack.c.bf16 %v1477_v43, %v1476_v42  ;;  %v1490_v50 = vpack.c.bf16 %v1479_v46, %v1478_v45 }
 0x882   :  { %v2723_v6 = vadd.f32 %v1330_v49, %v2470_v1  ;;  %v1337_v51 = vsel %vm210_vm0, %v2720_v47, 0.0  ;;  %v1480_v49 = vld [vmem:[#allocation20 + $0x50] sm:$0xff] }
 0x883   :  { %1338 = vadd.xlane.f32.xlu1 %v1337_v51  ;;  %1773 = vmatpush3.bf16.msra.mxu1 %v1489_v44  ;;  %v1481_v51 = vld [vmem:[#allocation20 + $0x58] sm:$0xff] }
 0x884   :  { %v1340_v63 = vsel %vm210_vm0, %v2723_v6, 0.0  ;;  %1774 = vmatprep.subr.bf16.mxu1 %v2217_v17 }
 0x885   :  { %1341 = vadd.xlane.f32.xlu0 %v1340_v63  ;;  %v1491_v63 = vpack.c.bf16 %v1481_v51, %v1480_v49 }
 0x887   :  { %1775 = vmatpush3.bf16.msra.mxu1 %v1490_v50 }
 0x888   :  { %1776 = vmatprep.subr.bf16.mxu1 %v2217_v17 }
 0x88b   :  { %1777 = vmatpush3.bf16.msra.mxu1 %v1491_v63 }
 0x88c   :  { %1778 = vmatprep.subr.bf16.mxu1 %v2217_v17 }
 0x910   :  { %v1339_v52 = vpop.xlane.xlu1 %1338 }
 0x911   :  { %v1343_v48 = vmul.f32 0.03125, %v1339_v52  ;;  %v1482_v52 = vld [vmem:[#allocation20 + $0x60] sm:$0xff] }
 0x912   :  { %v1342_v53 = vpop.xlane.xlu0 %1341 }
 0x913   :  { %v1345_v54 = vsub.f32 %v2720_v47, %v1343_v48  ;;  %v1344_v0 = vmul.f32 0.03125, %v1342_v53  ;;  %v1483_v48 = vld [vmem:[#allocation20 + $0x68] sm:$0xff] }
 0x914   :  { %v1492_v53 = vpack.c.bf16 %v1483_v48, %v1482_v52 }
 0x915   :  { %v1346_v56 = vsub.f32 %v2723_v6, %v1344_v0  ;;  %v1347_v57 = vmul.f32 %v1345_v54, %v1345_v54  ;;  %v1485_v0 = vld [vmem:[#allocation20 + $0x78] sm:$0xff] }
 0x916   :  { %1779 = vmatpush3.bf16.msra.mxu1 %v1492_v53 }
 0x917   :  { %v1349_v1 = vsel %vm210_vm0, %v1347_v57, 0.0  ;;  %v1348_v60 = vmul.f32 %v1346_v56, %v1346_v56  ;;  %1780 = vmatprep.subr.bf16.mxu1 %v2217_v17  ;;  %v1593_v57 = vld [vmem:[#allocation19] ss:$0 sm:$0xff] }
 0x918   :  { %1350 = vadd.xlane.f32.xlu0 %v1349_v1 }
 0x919   :  { %v1352_v61 = vsel %vm210_vm0, %v1348_v60, 0.0 }
 0x91c   :  { %1353 = vadd.xlane.f32.xlu0 %v1352_v61 }
 0x9a5   :  { %v1351_v11 = vpop.xlane.xlu0 %1350 }
 0x9a6   :  { %v1355_v12 = vmul.f32 0.03125, %v1351_v11 }
 0x9a8   :  { %v1357_v13 = vadd.f32 1e-05, %v1355_v12 }
 0x9a9   :  { %v1354_v14 = vpop.xlane.xlu0 %1353 }
 0x9aa   :  { %1866 = vrsqrt.f32 %v1357_v13  ;;  %v1356_v15 = vmul.f32 0.03125, %v1354_v14  ;;  %vm1361_vm11 = vcmp.eq.f32.partialorder %v1357_v13, inf  ;;  %v1364_v20 = vand.u32 2147483648, %v1357_v13 }
 0x9ab   :  { %vm1363_vm12 = vcmp.eq.f32.partialorder %v1357_v13, 0.0 }
 0x9ac   :  { %v1358_v16 = vadd.f32 1e-05, %v1356_v15 }
 0x9ae   :  { %1868 = vrsqrt.f32 %v1358_v16  ;;  %vm1368_vm13 = vcmp.eq.f32.partialorder %v1358_v16, inf  ;;  %v1371_v4 = vand.u32 2147483648, %v1358_v16  ;;  %vm1370_vm14 = vcmp.eq.f32.partialorder %v1358_v16, 0.0 }
 0x9b4   :  { %v1867_v18 = vpop.eup %1866 }
 0x9b5   :  { %v1360_v19 = vmul.f32 %v1867_v18, %v1357_v13 }
 0x9b7   :  { %v1362_v21 = vsel %vm1361_vm11, %v1357_v13, %v1360_v19 }
 0x9b8   :  { %v1365_v22 = vsel %vm1363_vm12, %v1364_v20, %v1362_v21  ;;  %v1869_v23 = vpop.eup %1868 }
 0x9b9   :  { %1870 = vrcp.f32 %v1365_v22  ;;  %v1367_v24 = vmul.f32 %v1869_v23, %v1358_v16 }
 0x9bb   :  { %v1369_v8 = vsel %vm1368_vm13, %v1358_v16, %v1367_v24 }
 0x9bc   :  { %v1372_v25 = vsel %vm1370_vm14, %v1371_v4, %v1369_v8 }
 0x9bd   :  { %1872 = vrcp.f32 %v1372_v25  ;;  %v1595_v25 = vld [vmem:[#allocation22] ss:$0 sm:$0xff] }
 0x9c3   :  { %v1871_v26 = vpop.eup %1870 }
 0x9c4   :  { %v1374_v58 = vmul.f32 %v1871_v26, %v1345_v54  ;;  %v1484_v54 = vld [vmem:[#allocation20 + $0x70] sm:$0xff] }
 0x9c6   :  { %v1383_v29 = vmul.f32 %v1591_v55, %v1374_v58 }
 0x9c7   :  { %v1873_v59 = vpop.eup %1872 }
 0x9c8   :  { %v1376_v28 = vmul.f32 %v1873_v59, %v1346_v56  ;;  %v1391_v27 = vadd.f32 %v1592_v30, %v1383_v29  ;;  %v1493_v56 = vpack.c.bf16 %v1485_v0, %v1484_v54 }
 0x9ca   :  { %v1384_v31 = vmul.f32 %v1591_v55, %v1376_v28  ;;  %1781 = vmatpush3.bf16.msra.mxu1 %v1493_v56 }
 0x9cc   :  { %v1392_v32 = vadd.f32 %v1592_v30, %v1384_v31 }
 0x9ce   :  { %v1393_v33 = vpack.c.bf16 %v1392_v32, %v1391_v27 }
 0x9d0   :  { %1763 = vmatmul.mubr.msk.bf16.vlgmr.msra.gmra.mrb[40].mxu0 %vm210_vm0, %v1393_v33 }
 0xaa3   :  { %v1444_v1 = vpop.f32.mrb[40].mxu0 }
 0xaa4   :  { %v1445_v60 = vadd.f32 %v1593_v57, %v1444_v1  ;;  %v1764_v61 = vpop.f32.mrb[41].mxu0 }
 0xaa5   :  { %v1447_v2 = vpop.f32.mrb[42].mxu0 }
 0xaa6   :  { %v1453_v3 = vmul.f32 %v1445_v60, %v1445_v60  ;;  %v1448_v5 = vadd.f32 %v1593_v57, %v1447_v2  ;;  %v1765_v7 = vpop.f32.mrb[43].mxu0  ;;  %v1451_v21 = vmul.f32 0.5, %v1445_v60 }
 0xaa8   :  { %v1455_v9 = vmul.f32 %v1453_v3, %v1445_v60  ;;  %v1454_v10 = vmul.f32 %v1448_v5, %v1448_v5  ;;  %v1452_v22 = vmul.f32 0.5, %v1448_v5 }
 0xaaa   :  { %v1457_v11 = vmul.f32 0.044715, %v1455_v9  ;;  %v1456_v12 = vmul.f32 %v1454_v10, %v1448_v5 }
 0xaac   :  { %v1459_v13 = vadd.f32 %v1457_v11, %v1445_v60  ;;  %v1458_v14 = vmul.f32 0.044715, %v1456_v12 }
 0xaae   :  { %v1461_v15 = vmul.f32 0.7978846, %v1459_v13  ;;  %v1460_v16 = vadd.f32 %v1458_v14, %v1448_v5 }
 0xab0   :  { %1874 = vtanh.f32 %v1461_v15  ;;  %v1462_v18 = vmul.f32 0.7978846, %v1460_v16 }
 0xab2   :  { %1876 = vtanh.f32 %v1462_v18 }
 0xaba   :  { %v1875_v17 = vpop.eup %1874 }
 0xabb   :  { %v1465_v19 = vadd.f32 1.0, %v1875_v17 }
 0xabc   :  { %v1877_v20 = vpop.eup %1876 }
 0xabd   :  { %v1466_v23 = vadd.f32 1.0, %v1877_v20  ;;  %v1467_v24 = vmul.f32 %v1465_v19, %v1451_v21 }
 0xabf   :  { %v1468_v4 = vmul.f32 %v1466_v23, %v1452_v22 }
 0xac1   :  { %v1469_v8 = vpack.c.bf16 %v1468_v4, %v1467_v24 }
 0xac3   :  { %1783 = vmatmul.mubr.bf16.vlgmr.msra.gmra.mrb[32].mxu1 %v1469_v8 }
 0xb96   :  { %v1535_v26 = vpop.f32.mrb[32].mxu1 }
 0xb97   :  { %v1536_v58 = vadd.f32 %v1595_v25, %v1535_v26  ;;  %v1784_v55 = vpop.f32.mrb[33].mxu1 }
 0xb98   :  { %v1538_v59 = vpop.f32.mrb[34].mxu1 }
 0xb99   :  { %v1542_v28 = vadd.f32 %v1536_v58, %v2720_v47  ;;  %v1539_v29 = vadd.f32 %v1595_v25, %v1538_v59  ;;  %v1785_v30 = vpop.f32.mrb[35].mxu1 }
 0xb9b   :  { %1544 = vst.msk [vmem:[#allocation23] sm:$0xff] %vm210_vm0, %v1542_v28  ;;  %v1543_v31 = vadd.f32 %v1539_v29, %v2723_v6 }
 0xb9d   :  { %1545 = vst.msk [vmem:[#allocation23 + $0x8] sm:$0xff] %vm210_vm0, %v1543_v31 }
 0xb9e   :  { %2175 = shalt.err (!%p2172_p10)
}
 0xb9f   :  { %s2176_s28 = scalar_lea.hbm %s2774_s13, 256 }
 0xba0   :  { %p2177_p11 = scmp.ne.s32.totalorder %s2774_s13, %s2176_s28  ;;  %p2180_p12 = scmp.lt.u32.totalorder %s2176_s28, %s2774_s13 }
 0xba2   :  { %p2182_p13 = pnand %p2180_p12, %p2177_p11 }
 0xba4   :  { %2185 = shalt.err (!%p2182_p13)
}
 0xba5   :  { %1557 = dma.vmem_to_hbm [thread:$0]  %s1552_s25, 256, %s2774_s13, [#allocation4], %s2205_s26, %s2205_s26, %s2206_s16  }
 0xba6   :  { %2200 = dma.done.wait [#allocation4], 256  }
 0xba7   :  { %2201 = vsyncadd [#allocation4], 4294967040 }
 0xba8   :  { %1561 = vsyncpa [#allocation3], 1 }
 0xba9   :  { %1562 = vsyncpa [#allocation6], 1 }
 0xbaa   :  { %1563 = vsyncpa [#allocation9], 1 }
 0xbab   :  { %1564 = vsyncpa [#allocation12], 1 }
 0xbac   :  { %1565 = vsyncpa [#allocation15], 1 }
 0xbad   :  { %1566 = vsyncpa [#allocation18], 1 }
 0xbae   :  { %1567 = vsyncpa [#allocation21], 1 }
 0xbaf   :  { %1568 = vsyncpa [#allocation4], 1 }

</bundles_post_ra>
